<compile_context>
chip_gen: v6e
topology: v6e:2x2x1
jax: 0.10.0
libtpu: 0.0.40
codegen_flags: <defaults>
</compile_context>

<pallas_src>
import functools

import jax
import jax.numpy as jnp
from jax import lax
from jax.experimental import pallas as pl
from jax.experimental.pallas import tpu as pltpu


# Cached choice of roll implementation.  Primary path is pltpu.roll (a single
# XLU lane rotate per tap); if the execution mode in use has no lowering for
# the TPU roll primitive (e.g. some interpret/emulation setups) we fall back
# once to jnp.roll (portable concat-of-slices) and remember the decision.
_ROLL_IMPL = {"impl": "tpu"}


def _conv_layer_kernel(x_ref, w_ref, b_ref, g_ref, bt_ref, *refs,
                       kh, kw, pad, h, w, c_in_pad, nb,
                       apply_norm, apply_activation, emit_res,
                       eps, neg_slope, roll_impl):
    # x_ref:   (nb, Cin_pad, M) bf16 -- flattened NCHW, channels zero-padded to
    #          a multiple of 16, spatially UNPADDED (replicate pad fused here).
    # w_ref:   (Cout, kh*kw*Cin_pad) bf16, row k = (i*kw + j)*Cin_pad + ci.
    # b_ref / g_ref / bt_ref: (Cout, 1) f32 bias / gamma / beta.
    # outputs: (nb, Cout, M); p_ref: (kh*kw*Cin_pad, nb*M) bf16 im2col scratch.
    if emit_res:
        out_ref, res_ref, p_ref = refs
    else:
        out_ref, p_ref = refs
        res_ref = None

    m = h * w

    def lane_roll(v, shift):
        # jnp.roll convention: roll(x, s)[..., i] == x[..., i - s].
        # pltpu.roll only accepts non-negative shifts, so callers pass
        # (m - k) instead of -k; wrapped lanes are fixed up by the selects.
        if roll_impl == "tpu":
            return pltpu.roll(v, shift, axis=1)
        return jnp.roll(v, shift, axis=1)

    # Edge masks from an in-kernel iota (no hidx/widx HBM inputs).
    idx = lax.broadcasted_iota(jnp.int32, (1, m), 1)
    col = idx % w                         # w is a power of two in practice
    first_row = idx < w
    last_row = idx >= (h - 1) * w
    first_col = col == 0
    last_col = col == w - 1

    # --- Build the bf16 im2col patch matrix, one sample at a time. ----------
    # Replicate padding is fused via lane rolls (XLU) + edge-clamp selects.
    # All scratch stores are full-tile aligned: row offsets are multiples of
    # c_in_pad (>= 16), lane offsets multiples of M (M is a multiple of 128).
    for s in range(nb):
        xs = x_ref[s]                                       # (Cin_pad, M) bf16
        vert = {0: xs}                                      # vertical taps
        for d in range(1, pad + 1):
            vert[-d] = jnp.where(first_row, vert[-(d - 1)],
                                 lane_roll(vert[-(d - 1)], w))
            vert[d] = jnp.where(last_row, vert[d - 1],
                                lane_roll(vert[d - 1], m - w))
        for i in range(kh):
            horiz = {0: vert[i - pad]}                      # horizontal taps
            for d in range(1, pad + 1):
                horiz[-d] = jnp.where(first_col, horiz[-(d - 1)],
                                      lane_roll(horiz[-(d - 1)], 1))
                horiz[d] = jnp.where(last_col, horiz[d - 1],
                                     lane_roll(horiz[d - 1], m - 1))
            for j in range(kw):
                t = i * kw + j
                p_ref[pl.ds(t * c_in_pad, c_in_pad), pl.ds(s * m, m)] = \
                    horiz[j - pad]

    # --- One im2col matmul for the whole block (bf16 in, f32 accumulate). ---
    conv = jnp.dot(w_ref[...], p_ref[...],
                   preferred_element_type=jnp.float32)       # (Cout, nb*M)
    conv = conv + b_ref[...]

    def leaky(v):
        return jnp.where(v >= 0, v, neg_slope * v)

    # --- Per-sample GroupNorm(1, C) + LeakyReLU epilogue, all in f32. -------
    for s in range(nb):
        conv_s = conv[:, s * m:(s + 1) * m]                  # lane-aligned slice
        out_s = conv_s
        if apply_norm:
            # Two-pass stats (mean, then centered variance): robust numerics.
            mean = jnp.mean(conv_s, keepdims=True)           # (1, 1)
            cent = conv_s - mean
            var = jnp.mean(cent * cent, keepdims=True)       # (1, 1)
            out_s = cent * lax.rsqrt(var + eps) * g_ref[...] + bt_ref[...]
        if apply_activation:
            out_s = leaky(out_s)
        out_ref[s] = out_s.astype(out_ref.dtype)
        if emit_res:
            res_s = leaky(conv_s) if apply_activation else conv_s
            res_ref[s] = res_s.astype(res_ref.dtype)


def conv_layer_forward(x_nchw, w_oihw, bias, gamma, beta, *,
                       kernel_size, stride_size=1,
                       apply_norm=True, apply_activation=True, residual=False,
                       samples_per_step=None, out_dtype=jnp.float32):
    # TODO(synk): stride_size > 1 needs strided tap construction in-kernel.
    assert stride_size == 1, "only stride 1 implemented"
    assert isinstance(kernel_size, int) and kernel_size % 2 == 1, \
        "odd int kernel sizes only"

    n, c_in, h, w = x_nchw.shape
    c_out = w_oihw.shape[0]
    kh = kw = kernel_size
    pad = kernel_size // 2
    m = h * w

    # Channels padded to one bf16 sublane tile (16) so every in-kernel scratch
    # store is a full unmasked tile store (perf-review sublane-alignment item).
    c_in_pad = ((c_in + 15) // 16) * 16
    k_dim = kh * kw * c_in_pad

    # Several samples per grid step to amortize the fixed per-step overhead.
    if samples_per_step is None:
        samples_per_step = 2 if n % 2 == 0 else 1
    nb = samples_per_step if n % samples_per_step == 0 else 1

    # Wrapper "glue": contiguous reshapes + tiny zero pads only.  No
    # activation-tensor transposes, no replicate-pad round trip (fused above).
    xf = x_nchw.reshape(n, c_in, m).astype(jnp.bfloat16)
    xf = jnp.pad(xf, ((0, 0), (0, c_in_pad - c_in), (0, 0)))
    w2 = jnp.transpose(w_oihw, (0, 2, 3, 1))                 # (Cout, kh, kw, Cin)
    w2 = jnp.pad(w2, ((0, 0), (0, 0), (0, 0), (0, c_in_pad - c_in)))
    w2 = w2.reshape(c_out, k_dim).astype(jnp.bfloat16)
    b2 = bias.reshape(c_out, 1).astype(jnp.float32)
    g2 = gamma.reshape(c_out, 1).astype(jnp.float32)
    bt2 = beta.reshape(c_out, 1).astype(jnp.float32)

    emit_res = bool(residual)
    out_shapes = [jax.ShapeDtypeStruct((n, c_out, m), out_dtype)]
    out_specs = [pl.BlockSpec((nb, c_out, m), lambda i: (i, 0, 0))]
    if emit_res:
        out_shapes.append(jax.ShapeDtypeStruct((n, c_out, m), out_dtype))
        out_specs.append(pl.BlockSpec((nb, c_out, m), lambda i: (i, 0, 0)))

    def run(roll_impl):
        kernel = functools.partial(
            _conv_layer_kernel, kh=kh, kw=kw, pad=pad, h=h, w=w,
            c_in_pad=c_in_pad, nb=nb, apply_norm=apply_norm,
            apply_activation=apply_activation, emit_res=emit_res,
            eps=1e-5, neg_slope=0.02, roll_impl=roll_impl)
        return pl.pallas_call(
            kernel,
            out_shape=tuple(out_shapes),
            grid_spec=pltpu.PrefetchScalarGridSpec(
                num_scalar_prefetch=0,
                grid=(n // nb,),
                in_specs=[
                    pl.BlockSpec((nb, c_in_pad, m), lambda i: (i, 0, 0)),  # x
                    pl.BlockSpec((c_out, k_dim), lambda i: (0, 0)),        # W
                    pl.BlockSpec((c_out, 1), lambda i: (0, 0)),            # bias
                    pl.BlockSpec((c_out, 1), lambda i: (0, 0)),            # gamma
                    pl.BlockSpec((c_out, 1), lambda i: (0, 0)),            # beta
                ],
                out_specs=tuple(out_specs),
                scratch_shapes=[pltpu.VMEM((k_dim, nb * m), jnp.bfloat16)],
            ),
            compiler_params=pltpu.CompilerParams(
                dimension_semantics=("parallel",)),
        )(xf, w2, b2, g2, bt2)

    if _ROLL_IMPL["impl"] == "tpu":
        try:
            results = run("tpu")
        except Exception:   # pragma: no cover - portability fallback
            _ROLL_IMPL["impl"] = "jnp"
            results = run("jnp")
    else:
        results = run("jnp")

    out = results[0].reshape(n, c_out, h, w)
    if emit_res:
        return out, results[1].reshape(n, c_out, h, w)
    return out


def conv_layer_reference(x, w, b, gamma, beta, *, kernel_size,
                         apply_norm=True, apply_activation=True, residual=False):
    """Pure-JAX reference matching the PyTorch module semantics (NCHW, f32)."""
    pad = kernel_size // 2
    xp = jnp.pad(x, ((0, 0), (0, 0), (pad, pad), (pad, pad)), mode="edge")
    conv = lax.conv_general_dilated(
        xp, w, window_strides=(1, 1), padding="VALID",
        dimension_numbers=("NCHW", "OIHW", "NCHW"),
        precision=lax.Precision.HIGHEST) + b[None, :, None, None]
    out = conv
    res = conv
    if apply_norm:
        mean = jnp.mean(conv, axis=(1, 2, 3), keepdims=True)
        var = jnp.mean((conv - mean) ** 2, axis=(1, 2, 3), keepdims=True)
        out = ((conv - mean) * lax.rsqrt(var + 1e-5)
               * gamma[None, :, None, None] + beta[None, :, None, None])

    def leaky(v):
        return jnp.where(v >= 0, v, 0.02 * v)

    if apply_activation:
        out = leaky(out)
        res = leaky(res)
    return (out, res) if residual else out


if __name__ == "__main__":
    # Small shapes consistent with the module: batch=2, in=4, out=8, 16x16, k=3
    N, C_IN, C_OUT, H, W, K = 2, 4, 8, 16, 16, 3

    key = jax.random.PRNGKey(0)
    kx, kw_, kb, kg, kbt = jax.random.split(key, 5)

    x = jax.random.normal(kx, (N, C_IN, H, W), jnp.float32)
    bound = 1.0 / (C_IN * K * K) ** 0.5
    w = jax.random.uniform(kw_, (C_OUT, C_IN, K, K), jnp.float32, -bound, bound)
    b = jax.random.uniform(kb, (C_OUT,), jnp.float32, -bound, bound)
    gamma = 1.0 + 0.1 * jax.random.normal(kg, (C_OUT,), jnp.float32)
    beta = 0.1 * jax.random.normal(kbt, (C_OUT,), jnp.float32)

    out, res = conv_layer_forward(
        x, w, b, gamma, beta, kernel_size=K, stride_size=1,
        apply_norm=True, apply_activation=True, residual=True)
    out, res = jax.block_until_ready((out, res))
    assert out.shape == (N, C_OUT, H, W) and res.shape == (N, C_OUT, H, W)

    # (a) Loose check vs the f32 reference (gap = bf16 input quantization only).
    ref_out, ref_res = conv_layer_reference(
        x, w, b, gamma, beta, kernel_size=K,
        apply_norm=True, apply_activation=True, residual=True)
    assert jnp.allclose(out, ref_out, atol=2e-2, rtol=2e-2)
    assert jnp.allclose(res, ref_res, atol=2e-2, rtol=2e-2)

    # (b) Tight check vs the reference on bf16-quantized inputs (isolates the
    #     kernel math from input quantization).
    xq = x.astype(jnp.bfloat16).astype(jnp.float32)
    wq = w.astype(jnp.bfloat16).astype(jnp.float32)
    refq_out, refq_res = conv_layer_reference(
        xq, wq, b, gamma, beta, kernel_size=K,
        apply_norm=True, apply_activation=True, residual=True)
    assert jnp.allclose(out, refq_out, atol=2e-3, rtol=2e-3)
    assert jnp.allclose(res, refq_res, atol=2e-3, rtol=2e-3)

    # (c) residual=False path: single output, no `res` writeback.
    out_only = conv_layer_forward(
        x, w, b, gamma, beta, kernel_size=K, stride_size=1,
        apply_norm=True, apply_activation=True, residual=False)
    out_only = jax.block_until_ready(out_only)
    assert out_only.shape == (N, C_OUT, H, W)
    assert jnp.allclose(out_only, ref_out, atol=2e-2, rtol=2e-2)

    # (d) bf16-output path (halves HBM writeback when the consumer allows it).
    out_bf16 = conv_layer_forward(
        x, w, b, gamma, beta, kernel_size=K, stride_size=1,
        apply_norm=True, apply_activation=True, residual=False,
        out_dtype=jnp.bfloat16)
    out_bf16 = jax.block_until_ready(out_bf16)
    assert out_bf16.dtype == jnp.bfloat16
    assert jnp.allclose(out_bf16.astype(jnp.float32), ref_out,
                        atol=3e-2, rtol=3e-2)

    print("KERNEL_OK")
</pallas_src>

<mosaic_0001>
module attributes {stable_mosaic.version = 11 : i64} {
  func.func @_conv_layer_kernel(%arg0: i32, %arg1: memref<2x16x256xbf16, #tpu.memory_space<vmem>>, %arg2: memref<8x144xbf16, #tpu.memory_space<vmem>>, %arg3: memref<8x1xf32, #tpu.memory_space<vmem>>, %arg4: memref<8x1xf32, #tpu.memory_space<vmem>>, %arg5: memref<8x1xf32, #tpu.memory_space<vmem>>, %arg6: memref<2x8x256xf32, #tpu.memory_space<vmem>>, %arg7: memref<2x8x256xf32, #tpu.memory_space<vmem>>, %arg8: memref<144x512xbf16, #tpu.memory_space<vmem>>) attributes {dimension_semantics = [#tpu.dimension_semantics<parallel>], iteration_bounds = array<i64: 1>, scalar_prefetch = 0 : i64, scratch_operands = 1 : i64, tpu.core_type = #tpu.core_type<tc>, window_params = [{transform_indices = @transform_0, window_bounds = array<i64: 2, 16, 256>}, {pipeline_mode = #tpu.pipeline_mode<synchronous>, transform_indices = @transform_1, window_bounds = array<i64: 8, 144>}, {pipeline_mode = #tpu.pipeline_mode<synchronous>, transform_indices = @transform_2, window_bounds = array<i64: 8, 1>}, {pipeline_mode = #tpu.pipeline_mode<synchronous>, transform_indices = @transform_3, window_bounds = array<i64: 8, 1>}, {pipeline_mode = #tpu.pipeline_mode<synchronous>, transform_indices = @transform_4, window_bounds = array<i64: 8, 1>}, {transform_indices = @transform_5, window_bounds = array<i64: 2, 8, 256>}, {transform_indices = @transform_6, window_bounds = array<i64: 2, 8, 256>}]} {
    %0 = tpu.iota {dimensions = array<i32: 1>} : vector<1x256xi32>
    %c16_i32 = arith.constant 16 : i32
    %c0_i32 = arith.constant 0 : i32
    %1 = arith.cmpi eq, %c16_i32, %c0_i32 : i32
    %c1_i32 = arith.constant 1 : i32
    %2 = arith.select %1, %c1_i32, %c16_i32 : i32
    %3 = vector.broadcast %2 : i32 to vector<1x256xi32>
    %4 = arith.remsi %0, %3 : vector<1x256xi32>
    %c0_i32_0 = arith.constant 0 : i32
    %5 = vector.broadcast %c0_i32_0 : i32 to vector<1x256xi32>
    %6 = arith.cmpi ne, %4, %5 : vector<1x256xi32>
    %c0_i32_1 = arith.constant 0 : i32
    %7 = vector.broadcast %c0_i32_1 : i32 to vector<1x256xi32>
    %8 = arith.cmpi slt, %4, %7 : vector<1x256xi32>
    %c0_i32_2 = arith.constant 0 : i32
    %9 = arith.cmpi slt, %2, %c0_i32_2 : i32
    %10 = vector.broadcast %9 : i1 to vector<1x256xi1>
    %11 = vector.broadcast %10 : vector<1x256xi1> to vector<1x256xi1>
    %12 = arith.xori %8, %11 : vector<1x256xi1>
    %13 = arith.andi %12, %6 : vector<1x256xi1>
    %14 = vector.broadcast %2 : i32 to vector<1x256xi32>
    %15 = arith.addi %4, %14 : vector<1x256xi32>
    %16 = arith.select %13, %15, %4 : vector<1x256xi1>, vector<1x256xi32>
    %c16_i32_3 = arith.constant 16 : i32
    %17 = vector.broadcast %c16_i32_3 : i32 to vector<1x256xi32>
    %18 = arith.cmpi slt, %0, %17 : vector<1x256xi32>
    %c240_i32 = arith.constant 240 : i32
    %19 = vector.broadcast %c240_i32 : i32 to vector<1x256xi32>
    %20 = arith.cmpi sge, %0, %19 : vector<1x256xi32>
    %c0_i32_4 = arith.constant 0 : i32
    %21 = vector.broadcast %c0_i32_4 : i32 to vector<1x256xi32>
    %22 = arith.cmpi eq, %16, %21 : vector<1x256xi32>
    %c15_i32 = arith.constant 15 : i32
    %23 = vector.broadcast %c15_i32 : i32 to vector<1x256xi32>
    %24 = arith.cmpi eq, %16, %23 : vector<1x256xi32>
    %c0 = arith.constant 0 : index
    %c0_5 = arith.constant 0 : index
    %c0_6 = arith.constant 0 : index
    %25 = vector.load %arg1[%c0, %c0_5, %c0_6] : memref<2x16x256xbf16, #tpu.memory_space<vmem>>, vector<1x16x256xbf16>
    %26 = vector.shape_cast %25 : vector<1x16x256xbf16> to vector<16x256xbf16>
    %c16_i32_7 = arith.constant 16 : i32
    %27 = tpu.dynamic_rotate %26 by %c16_i32_7 dim 1 : vector<16x256xbf16>, i32 -> vector<16x256xbf16>
    %28 = vector.shape_cast %18 : vector<1x256xi1> to vector<1x256xi1>
    %29 = vector.broadcast %28 : vector<1x256xi1> to vector<16x256xi1>
    %30 = arith.select %29, %26, %27 : vector<16x256xi1>, vector<16x256xbf16>
    %c240_i32_8 = arith.constant 240 : i32
    %31 = tpu.dynamic_rotate %26 by %c240_i32_8 dim 1 : vector<16x256xbf16>, i32 -> vector<16x256xbf16>
    %32 = vector.shape_cast %20 : vector<1x256xi1> to vector<1x256xi1>
    %33 = vector.broadcast %32 : vector<1x256xi1> to vector<16x256xi1>
    %34 = arith.select %33, %26, %31 : vector<16x256xi1>, vector<16x256xbf16>
    %c1_i32_9 = arith.constant 1 : i32
    %35 = tpu.dynamic_rotate %30 by %c1_i32_9 dim 1 : vector<16x256xbf16>, i32 -> vector<16x256xbf16>
    %36 = vector.shape_cast %22 : vector<1x256xi1> to vector<1x256xi1>
    %37 = vector.broadcast %36 : vector<1x256xi1> to vector<16x256xi1>
    %38 = arith.select %37, %30, %35 : vector<16x256xi1>, vector<16x256xbf16>
    %c255_i32 = arith.constant 255 : i32
    %39 = tpu.dynamic_rotate %30 by %c255_i32 dim 1 : vector<16x256xbf16>, i32 -> vector<16x256xbf16>
    %40 = vector.shape_cast %24 : vector<1x256xi1> to vector<1x256xi1>
    %41 = vector.broadcast %40 : vector<1x256xi1> to vector<16x256xi1>
    %42 = arith.select %41, %30, %39 : vector<16x256xi1>, vector<16x256xbf16>
    %c0_10 = arith.constant 0 : index
    %c0_11 = arith.constant 0 : index
    %43 = vector.load %arg8[%c0_10, %c0_11] : memref<144x512xbf16, #tpu.memory_space<vmem>>, vector<16x256xbf16>
    tpu.vector_store %arg8[%c0_10, %c0_11], %38 {strides = array<i32>} : memref<144x512xbf16, #tpu.memory_space<vmem>>, vector<16x256xbf16>,
    %c16 = arith.constant 16 : index
    %c0_12 = arith.constant 0 : index
    %44 = vector.load %arg8[%c16, %c0_12] : memref<144x512xbf16, #tpu.memory_space<vmem>>, vector<16x256xbf16>
    tpu.vector_store %arg8[%c16, %c0_12], %30 {strides = array<i32>} : memref<144x512xbf16, #tpu.memory_space<vmem>>, vector<16x256xbf16>,
    %c32 = arith.constant 32 : index
    %c0_13 = arith.constant 0 : index
    %45 = vector.load %arg8[%c32, %c0_13] : memref<144x512xbf16, #tpu.memory_space<vmem>>, vector<16x256xbf16>
    tpu.vector_store %arg8[%c32, %c0_13], %42 {strides = array<i32>} : memref<144x512xbf16, #tpu.memory_space<vmem>>, vector<16x256xbf16>,
    %c1_i32_14 = arith.constant 1 : i32
    %46 = tpu.dynamic_rotate %26 by %c1_i32_14 dim 1 : vector<16x256xbf16>, i32 -> vector<16x256xbf16>
    %47 = vector.shape_cast %22 : vector<1x256xi1> to vector<1x256xi1>
    %48 = vector.broadcast %47 : vector<1x256xi1> to vector<16x256xi1>
    %49 = arith.select %48, %26, %46 : vector<16x256xi1>, vector<16x256xbf16>
    %c255_i32_15 = arith.constant 255 : i32
    %50 = tpu.dynamic_rotate %26 by %c255_i32_15 dim 1 : vector<16x256xbf16>, i32 -> vector<16x256xbf16>
    %51 = vector.shape_cast %24 : vector<1x256xi1> to vector<1x256xi1>
    %52 = vector.broadcast %51 : vector<1x256xi1> to vector<16x256xi1>
    %53 = arith.select %52, %26, %50 : vector<16x256xi1>, vector<16x256xbf16>
    %c48 = arith.constant 48 : index
    %c0_16 = arith.constant 0 : index
    %54 = vector.load %arg8[%c48, %c0_16] : memref<144x512xbf16, #tpu.memory_space<vmem>>, vector<16x256xbf16>
    tpu.vector_store %arg8[%c48, %c0_16], %49 {strides = array<i32>} : memref<144x512xbf16, #tpu.memory_space<vmem>>, vector<16x256xbf16>,
    %c64 = arith.constant 64 : index
    %c0_17 = arith.constant 0 : index
    %55 = vector.load %arg8[%c64, %c0_17] : memref<144x512xbf16, #tpu.memory_space<vmem>>, vector<16x256xbf16>
    tpu.vector_store %arg8[%c64, %c0_17], %26 {strides = array<i32>} : memref<144x512xbf16, #tpu.memory_space<vmem>>, vector<16x256xbf16>,
    %c80 = arith.constant 80 : index
    %c0_18 = arith.constant 0 : index
    %56 = vector.load %arg8[%c80, %c0_18] : memref<144x512xbf16, #tpu.memory_space<vmem>>, vector<16x256xbf16>
    tpu.vector_store %arg8[%c80, %c0_18], %53 {strides = array<i32>} : memref<144x512xbf16, #tpu.memory_space<vmem>>, vector<16x256xbf16>,
    %c1_i32_19 = arith.constant 1 : i32
    %57 = tpu.dynamic_rotate %34 by %c1_i32_19 dim 1 : vector<16x256xbf16>, i32 -> vector<16x256xbf16>
    %58 = vector.shape_cast %22 : vector<1x256xi1> to vector<1x256xi1>
    %59 = vector.broadcast %58 : vector<1x256xi1> to vector<16x256xi1>
    %60 = arith.select %59, %34, %57 : vector<16x256xi1>, vector<16x256xbf16>
    %c255_i32_20 = arith.constant 255 : i32
    %61 = tpu.dynamic_rotate %34 by %c255_i32_20 dim 1 : vector<16x256xbf16>, i32 -> vector<16x256xbf16>
    %62 = vector.shape_cast %24 : vector<1x256xi1> to vector<1x256xi1>
    %63 = vector.broadcast %62 : vector<1x256xi1> to vector<16x256xi1>
    %64 = arith.select %63, %34, %61 : vector<16x256xi1>, vector<16x256xbf16>
    %c96 = arith.constant 96 : index
    %c0_21 = arith.constant 0 : index
    %65 = vector.load %arg8[%c96, %c0_21] : memref<144x512xbf16, #tpu.memory_space<vmem>>, vector<16x256xbf16>
    tpu.vector_store %arg8[%c96, %c0_21], %60 {strides = array<i32>} : memref<144x512xbf16, #tpu.memory_space<vmem>>, vector<16x256xbf16>,
    %c112 = arith.constant 112 : index
    %c0_22 = arith.constant 0 : index
    %66 = vector.load %arg8[%c112, %c0_22] : memref<144x512xbf16, #tpu.memory_space<vmem>>, vector<16x256xbf16>
    tpu.vector_store %arg8[%c112, %c0_22], %34 {strides = array<i32>} : memref<144x512xbf16, #tpu.memory_space<vmem>>, vector<16x256xbf16>,
    %c128 = arith.constant 128 : index
    %c0_23 = arith.constant 0 : index
    %67 = vector.load %arg8[%c128, %c0_23] : memref<144x512xbf16, #tpu.memory_space<vmem>>, vector<16x256xbf16>
    tpu.vector_store %arg8[%c128, %c0_23], %64 {strides = array<i32>} : memref<144x512xbf16, #tpu.memory_space<vmem>>, vector<16x256xbf16>,
    %c1 = arith.constant 1 : index
    %c0_24 = arith.constant 0 : index
    %c0_25 = arith.constant 0 : index
    %68 = vector.load %arg1[%c1, %c0_24, %c0_25] : memref<2x16x256xbf16, #tpu.memory_space<vmem>>, vector<1x16x256xbf16>
    %69 = vector.shape_cast %68 : vector<1x16x256xbf16> to vector<16x256xbf16>
    %c16_i32_26 = arith.constant 16 : i32
    %70 = tpu.dynamic_rotate %69 by %c16_i32_26 dim 1 : vector<16x256xbf16>, i32 -> vector<16x256xbf16>
    %71 = vector.shape_cast %18 : vector<1x256xi1> to vector<1x256xi1>
    %72 = vector.broadcast %71 : vector<1x256xi1> to vector<16x256xi1>
    %73 = arith.select %72, %69, %70 : vector<16x256xi1>, vector<16x256xbf16>
    %c240_i32_27 = arith.constant 240 : i32
    %74 = tpu.dynamic_rotate %69 by %c240_i32_27 dim 1 : vector<16x256xbf16>, i32 -> vector<16x256xbf16>
    %75 = vector.shape_cast %20 : vector<1x256xi1> to vector<1x256xi1>
    %76 = vector.broadcast %75 : vector<1x256xi1> to vector<16x256xi1>
    %77 = arith.select %76, %69, %74 : vector<16x256xi1>, vector<16x256xbf16>
    %c1_i32_28 = arith.constant 1 : i32
    %78 = tpu.dynamic_rotate %73 by %c1_i32_28 dim 1 : vector<16x256xbf16>, i32 -> vector<16x256xbf16>
    %79 = vector.shape_cast %22 : vector<1x256xi1> to vector<1x256xi1>
    %80 = vector.broadcast %79 : vector<1x256xi1> to vector<16x256xi1>
    %81 = arith.select %80, %73, %78 : vector<16x256xi1>, vector<16x256xbf16>
    %c255_i32_29 = arith.constant 255 : i32
    %82 = tpu.dynamic_rotate %73 by %c255_i32_29 dim 1 : vector<16x256xbf16>, i32 -> vector<16x256xbf16>
    %83 = vector.shape_cast %24 : vector<1x256xi1> to vector<1x256xi1>
    %84 = vector.broadcast %83 : vector<1x256xi1> to vector<16x256xi1>
    %85 = arith.select %84, %73, %82 : vector<16x256xi1>, vector<16x256xbf16>
    %c0_30 = arith.constant 0 : index
    %c256 = arith.constant 256 : index
    %86 = vector.load %arg8[%c0_30, %c256] : memref<144x512xbf16, #tpu.memory_space<vmem>>, vector<16x256xbf16>
    tpu.vector_store %arg8[%c0_30, %c256], %81 {strides = array<i32>} : memref<144x512xbf16, #tpu.memory_space<vmem>>, vector<16x256xbf16>,
    %c16_31 = arith.constant 16 : index
    %c256_32 = arith.constant 256 : index
    %87 = vector.load %arg8[%c16_31, %c256_32] : memref<144x512xbf16, #tpu.memory_space<vmem>>, vector<16x256xbf16>
    tpu.vector_store %arg8[%c16_31, %c256_32], %73 {strides = array<i32>} : memref<144x512xbf16, #tpu.memory_space<vmem>>, vector<16x256xbf16>,
    %c32_33 = arith.constant 32 : index
    %c256_34 = arith.constant 256 : index
    %88 = vector.load %arg8[%c32_33, %c256_34] : memref<144x512xbf16, #tpu.memory_space<vmem>>, vector<16x256xbf16>
    tpu.vector_store %arg8[%c32_33, %c256_34], %85 {strides = array<i32>} : memref<144x512xbf16, #tpu.memory_space<vmem>>, vector<16x256xbf16>,
    %c1_i32_35 = arith.constant 1 : i32
    %89 = tpu.dynamic_rotate %69 by %c1_i32_35 dim 1 : vector<16x256xbf16>, i32 -> vector<16x256xbf16>
    %90 = vector.shape_cast %22 : vector<1x256xi1> to vector<1x256xi1>
    %91 = vector.broadcast %90 : vector<1x256xi1> to vector<16x256xi1>
    %92 = arith.select %91, %69, %89 : vector<16x256xi1>, vector<16x256xbf16>
    %c255_i32_36 = arith.constant 255 : i32
    %93 = tpu.dynamic_rotate %69 by %c255_i32_36 dim 1 : vector<16x256xbf16>, i32 -> vector<16x256xbf16>
    %94 = vector.shape_cast %24 : vector<1x256xi1> to vector<1x256xi1>
    %95 = vector.broadcast %94 : vector<1x256xi1> to vector<16x256xi1>
    %96 = arith.select %95, %69, %93 : vector<16x256xi1>, vector<16x256xbf16>
    %c48_37 = arith.constant 48 : index
    %c256_38 = arith.constant 256 : index
    %97 = vector.load %arg8[%c48_37, %c256_38] : memref<144x512xbf16, #tpu.memory_space<vmem>>, vector<16x256xbf16>
    tpu.vector_store %arg8[%c48_37, %c256_38], %92 {strides = array<i32>} : memref<144x512xbf16, #tpu.memory_space<vmem>>, vector<16x256xbf16>,
    %c64_39 = arith.constant 64 : index
    %c256_40 = arith.constant 256 : index
    %98 = vector.load %arg8[%c64_39, %c256_40] : memref<144x512xbf16, #tpu.memory_space<vmem>>, vector<16x256xbf16>
    tpu.vector_store %arg8[%c64_39, %c256_40], %69 {strides = array<i32>} : memref<144x512xbf16, #tpu.memory_space<vmem>>, vector<16x256xbf16>,
    %c80_41 = arith.constant 80 : index
    %c256_42 = arith.constant 256 : index
    %99 = vector.load %arg8[%c80_41, %c256_42] : memref<144x512xbf16, #tpu.memory_space<vmem>>, vector<16x256xbf16>
    tpu.vector_store %arg8[%c80_41, %c256_42], %96 {strides = array<i32>} : memref<144x512xbf16, #tpu.memory_space<vmem>>, vector<16x256xbf16>,
    %c1_i32_43 = arith.constant 1 : i32
    %100 = tpu.dynamic_rotate %77 by %c1_i32_43 dim 1 : vector<16x256xbf16>, i32 -> vector<16x256xbf16>
    %101 = vector.shape_cast %22 : vector<1x256xi1> to vector<1x256xi1>
    %102 = vector.broadcast %101 : vector<1x256xi1> to vector<16x256xi1>
    %103 = arith.select %102, %77, %100 : vector<16x256xi1>, vector<16x256xbf16>
    %c255_i32_44 = arith.constant 255 : i32
    %104 = tpu.dynamic_rotate %77 by %c255_i32_44 dim 1 : vector<16x256xbf16>, i32 -> vector<16x256xbf16>
    %105 = vector.shape_cast %24 : vector<1x256xi1> to vector<1x256xi1>
    %106 = vector.broadcast %105 : vector<1x256xi1> to vector<16x256xi1>
    %107 = arith.select %106, %77, %104 : vector<16x256xi1>, vector<16x256xbf16>
    %c96_45 = arith.constant 96 : index
    %c256_46 = arith.constant 256 : index
    %108 = vector.load %arg8[%c96_45, %c256_46] : memref<144x512xbf16, #tpu.memory_space<vmem>>, vector<16x256xbf16>
    tpu.vector_store %arg8[%c96_45, %c256_46], %103 {strides = array<i32>} : memref<144x512xbf16, #tpu.memory_space<vmem>>, vector<16x256xbf16>,
    %c112_47 = arith.constant 112 : index
    %c256_48 = arith.constant 256 : index
    %109 = vector.load %arg8[%c112_47, %c256_48] : memref<144x512xbf16, #tpu.memory_space<vmem>>, vector<16x256xbf16>
    tpu.vector_store %arg8[%c112_47, %c256_48], %77 {strides = array<i32>} : memref<144x512xbf16, #tpu.memory_space<vmem>>, vector<16x256xbf16>,
    %c128_49 = arith.constant 128 : index
    %c256_50 = arith.constant 256 : index
    %110 = vector.load %arg8[%c128_49, %c256_50] : memref<144x512xbf16, #tpu.memory_space<vmem>>, vector<16x256xbf16>
    tpu.vector_store %arg8[%c128_49, %c256_50], %107 {strides = array<i32>} : memref<144x512xbf16, #tpu.memory_space<vmem>>, vector<16x256xbf16>,
    %c0_51 = arith.constant 0 : index
    %c0_52 = arith.constant 0 : index
    %111 = vector.load %arg2[%c0_51, %c0_52] : memref<8x144xbf16, #tpu.memory_space<vmem>>, vector<8x144xbf16>
    %c0_53 = arith.constant 0 : index
    %c0_54 = arith.constant 0 : index
    %112 = vector.load %arg8[%c0_53, %c0_54] : memref<144x512xbf16, #tpu.memory_space<vmem>>, vector<144x512xbf16>
    %cst = arith.constant dense<0.000000e+00> : vector<8x512xf32>
    %113 = tpu.matmul %111, %112, %cst {dimension_numbers = #tpu.dot_dimension_numbers<[1], [0], [0], [1], [0, 0, 1, 1], [], []>} : vector<8x144xbf16>, vector<144x512xbf16>, vector<8x512xf32> -> vector<8x512xf32>
    %c0_55 = arith.constant 0 : index
    %c0_56 = arith.constant 0 : index
    %114 = vector.load %arg3[%c0_55, %c0_56] : memref<8x1xf32, #tpu.memory_space<vmem>>, vector<8x1xf32>
    %115 = vector.broadcast %114 : vector<8x1xf32> to vector<8x512xf32>
    %116 = arith.addf %113, %115 : vector<8x512xf32>
    %117 = vector.extract_strided_slice %116 {offsets = [0, 0], sizes = [8, 256], strides = [1, 1]} : vector<8x512xf32> to vector<8x256xf32>
    %118 = vector.shape_cast %117 : vector<8x256xf32> to vector<1x8x256xf32>
    %cst_57 = arith.constant dense<0.000000e+00> : vector<1xf32>
    %119 = vector.multi_reduction <add>, %118, %cst_57 [1, 2] : vector<1x8x256xf32> to vector<1xf32>
    %120 = vector.shape_cast %119 : vector<1xf32> to vector<1x1x1xf32>
    %121 = vector.extract %120[0, 0, 0] : f32 from vector<1x1x1xf32>
    %122 = vector.broadcast %121 : f32 to vector<1x1xf32>
    %cst_58 = arith.constant 2.048000e+03 : f32
    %123 = vector.broadcast %cst_58 : f32 to vector<1x1xf32>
    %124 = arith.divf %122, %123 : vector<1x1xf32>
    %125 = vector.broadcast %124 : vector<1x1xf32> to vector<8x256xf32>
    %126 = arith.subf %117, %125 : vector<8x256xf32>
    %127 = arith.mulf %126, %126 : vector<8x256xf32>
    %128 = vector.shape_cast %127 : vector<8x256xf32> to vector<1x8x256xf32>
    %cst_59 = arith.constant dense<0.000000e+00> : vector<1xf32>
    %129 = vector.multi_reduction <add>, %128, %cst_59 [1, 2] : vector<1x8x256xf32> to vector<1xf32>
    %130 = vector.shape_cast %129 : vector<1xf32> to vector<1x1x1xf32>
    %131 = vector.extract %130[0, 0, 0] : f32 from vector<1x1x1xf32>
    %132 = vector.broadcast %131 : f32 to vector<1x1xf32>
    %cst_60 = arith.constant 2.048000e+03 : f32
    %133 = vector.broadcast %cst_60 : f32 to vector<1x1xf32>
    %134 = arith.divf %132, %133 : vector<1x1xf32>
    %cst_61 = arith.constant 9.99999974E-6 : f32
    %135 = vector.broadcast %cst_61 : f32 to vector<1x1xf32>
    %136 = arith.addf %134, %135 : vector<1x1xf32>
    %137 = math.rsqrt %136 : vector<1x1xf32>
    %138 = vector.broadcast %137 : vector<1x1xf32> to vector<8x256xf32>
    %139 = arith.mulf %126, %138 : vector<8x256xf32>
    %c0_62 = arith.constant 0 : index
    %c0_63 = arith.constant 0 : index
    %140 = vector.load %arg4[%c0_62, %c0_63] : memref<8x1xf32, #tpu.memory_space<vmem>>, vector<8x1xf32>
    %141 = vector.broadcast %140 : vector<8x1xf32> to vector<8x256xf32>
    %142 = arith.mulf %139, %141 : vector<8x256xf32>
    %c0_64 = arith.constant 0 : index
    %c0_65 = arith.constant 0 : index
    %143 = vector.load %arg5[%c0_64, %c0_65] : memref<8x1xf32, #tpu.memory_space<vmem>>, vector<8x1xf32>
    %144 = vector.broadcast %143 : vector<8x1xf32> to vector<8x256xf32>
    %145 = arith.addf %142, %144 : vector<8x256xf32>
    %cst_66 = arith.constant 0.000000e+00 : f32
    %146 = vector.broadcast %cst_66 : f32 to vector<8x256xf32>
    %147 = arith.cmpf oge, %145, %146 : vector<8x256xf32>
    %cst_67 = arith.constant 2.000000e-02 : f32
    %148 = vector.broadcast %cst_67 : f32 to vector<8x256xf32>
    %149 = arith.mulf %148, %145 : vector<8x256xf32>
    %150 = arith.select %147, %145, %149 : vector<8x256xi1>, vector<8x256xf32>
    %c0_68 = arith.constant 0 : index
    %c0_69 = arith.constant 0 : index
    %c0_70 = arith.constant 0 : index
    %151 = vector.load %arg6[%c0_68, %c0_69, %c0_70] : memref<2x8x256xf32, #tpu.memory_space<vmem>>, vector<1x8x256xf32>
    %152 = vector.shape_cast %151 : vector<1x8x256xf32> to vector<8x256xf32>
    %153 = vector.shape_cast %150 : vector<8x256xf32> to vector<1x8x256xf32>
    tpu.vector_store %arg6[%c0_68, %c0_69, %c0_70], %153 {strides = array<i32>} : memref<2x8x256xf32, #tpu.memory_space<vmem>>, vector<1x8x256xf32>,
    %cst_71 = arith.constant 0.000000e+00 : f32
    %154 = vector.broadcast %cst_71 : f32 to vector<8x256xf32>
    %155 = arith.cmpf oge, %117, %154 : vector<8x256xf32>
    %cst_72 = arith.constant 2.000000e-02 : f32
    %156 = vector.broadcast %cst_72 : f32 to vector<8x256xf32>
    %157 = arith.mulf %156, %117 : vector<8x256xf32>
    %158 = arith.select %155, %117, %157 : vector<8x256xi1>, vector<8x256xf32>
    %c0_73 = arith.constant 0 : index
    %c0_74 = arith.constant 0 : index
    %c0_75 = arith.constant 0 : index
    %159 = vector.load %arg7[%c0_73, %c0_74, %c0_75] : memref<2x8x256xf32, #tpu.memory_space<vmem>>, vector<1x8x256xf32>
    %160 = vector.shape_cast %159 : vector<1x8x256xf32> to vector<8x256xf32>
    %161 = vector.shape_cast %158 : vector<8x256xf32> to vector<1x8x256xf32>
    tpu.vector_store %arg7[%c0_73, %c0_74, %c0_75], %161 {strides = array<i32>} : memref<2x8x256xf32, #tpu.memory_space<vmem>>, vector<1x8x256xf32>,
    %162 = vector.extract_strided_slice %116 {offsets = [0, 256], sizes = [8, 256], strides = [1, 1]} : vector<8x512xf32> to vector<8x256xf32>
    %163 = vector.shape_cast %162 : vector<8x256xf32> to vector<1x8x256xf32>
    %cst_76 = arith.constant dense<0.000000e+00> : vector<1xf32>
    %164 = vector.multi_reduction <add>, %163, %cst_76 [1, 2] : vector<1x8x256xf32> to vector<1xf32>
    %165 = vector.shape_cast %164 : vector<1xf32> to vector<1x1x1xf32>
    %166 = vector.extract %165[0, 0, 0] : f32 from vector<1x1x1xf32>
    %167 = vector.broadcast %166 : f32 to vector<1x1xf32>
    %cst_77 = arith.constant 2.048000e+03 : f32
    %168 = vector.broadcast %cst_77 : f32 to vector<1x1xf32>
    %169 = arith.divf %167, %168 : vector<1x1xf32>
    %170 = vector.broadcast %169 : vector<1x1xf32> to vector<8x256xf32>
    %171 = arith.subf %162, %170 : vector<8x256xf32>
    %172 = arith.mulf %171, %171 : vector<8x256xf32>
    %173 = vector.shape_cast %172 : vector<8x256xf32> to vector<1x8x256xf32>
    %cst_78 = arith.constant dense<0.000000e+00> : vector<1xf32>
    %174 = vector.multi_reduction <add>, %173, %cst_78 [1, 2] : vector<1x8x256xf32> to vector<1xf32>
    %175 = vector.shape_cast %174 : vector<1xf32> to vector<1x1x1xf32>
    %176 = vector.extract %175[0, 0, 0] : f32 from vector<1x1x1xf32>
    %177 = vector.broadcast %176 : f32 to vector<1x1xf32>
    %cst_79 = arith.constant 2.048000e+03 : f32
    %178 = vector.broadcast %cst_79 : f32 to vector<1x1xf32>
    %179 = arith.divf %177, %178 : vector<1x1xf32>
    %cst_80 = arith.constant 9.99999974E-6 : f32
    %180 = vector.broadcast %cst_80 : f32 to vector<1x1xf32>
    %181 = arith.addf %179, %180 : vector<1x1xf32>
    %182 = math.rsqrt %181 : vector<1x1xf32>
    %183 = vector.broadcast %182 : vector<1x1xf32> to vector<8x256xf32>
    %184 = arith.mulf %171, %183 : vector<8x256xf32>
    %c0_81 = arith.constant 0 : index
    %c0_82 = arith.constant 0 : index
    %185 = vector.load %arg4[%c0_81, %c0_82] : memref<8x1xf32, #tpu.memory_space<vmem>>, vector<8x1xf32>
    %186 = vector.broadcast %185 : vector<8x1xf32> to vector<8x256xf32>
    %187 = arith.mulf %184, %186 : vector<8x256xf32>
    %c0_83 = arith.constant 0 : index
    %c0_84 = arith.constant 0 : index
    %188 = vector.load %arg5[%c0_83, %c0_84] : memref<8x1xf32, #tpu.memory_space<vmem>>, vector<8x1xf32>
    %189 = vector.broadcast %188 : vector<8x1xf32> to vector<8x256xf32>
    %190 = arith.addf %187, %189 : vector<8x256xf32>
    %cst_85 = arith.constant 0.000000e+00 : f32
    %191 = vector.broadcast %cst_85 : f32 to vector<8x256xf32>
    %192 = arith.cmpf oge, %190, %191 : vector<8x256xf32>
    %cst_86 = arith.constant 2.000000e-02 : f32
    %193 = vector.broadcast %cst_86 : f32 to vector<8x256xf32>
    %194 = arith.mulf %193, %190 : vector<8x256xf32>
    %195 = arith.select %192, %190, %194 : vector<8x256xi1>, vector<8x256xf32>
    %c1_87 = arith.constant 1 : index
    %c0_88 = arith.constant 0 : index
    %c0_89 = arith.constant 0 : index
    %196 = vector.load %arg6[%c1_87, %c0_88, %c0_89] : memref<2x8x256xf32, #tpu.memory_space<vmem>>, vector<1x8x256xf32>
    %197 = vector.shape_cast %196 : vector<1x8x256xf32> to vector<8x256xf32>
    %198 = vector.shape_cast %195 : vector<8x256xf32> to vector<1x8x256xf32>
    tpu.vector_store %arg6[%c1_87, %c0_88, %c0_89], %198 {strides = array<i32>} : memref<2x8x256xf32, #tpu.memory_space<vmem>>, vector<1x8x256xf32>,
    %cst_90 = arith.constant 0.000000e+00 : f32
    %199 = vector.broadcast %cst_90 : f32 to vector<8x256xf32>
    %200 = arith.cmpf oge, %162, %199 : vector<8x256xf32>
    %cst_91 = arith.constant 2.000000e-02 : f32
    %201 = vector.broadcast %cst_91 : f32 to vector<8x256xf32>
    %202 = arith.mulf %201, %162 : vector<8x256xf32>
    %203 = arith.select %200, %162, %202 : vector<8x256xi1>, vector<8x256xf32>
    %c1_92 = arith.constant 1 : index
    %c0_93 = arith.constant 0 : index
    %c0_94 = arith.constant 0 : index
    %204 = vector.load %arg7[%c1_92, %c0_93, %c0_94] : memref<2x8x256xf32, #tpu.memory_space<vmem>>, vector<1x8x256xf32>
    %205 = vector.shape_cast %204 : vector<1x8x256xf32> to vector<8x256xf32>
    %206 = vector.shape_cast %203 : vector<8x256xf32> to vector<1x8x256xf32>
    tpu.vector_store %arg7[%c1_92, %c0_93, %c0_94], %206 {strides = array<i32>} : memref<2x8x256xf32, #tpu.memory_space<vmem>>, vector<1x8x256xf32>,
    return
  }
  func.func @transform_0(%arg0: i32) -> (i32, i32, i32) {
    %c0_i32 = arith.constant 0 : i32
    %c0_i32_0 = arith.constant 0 : i32
    %c0_i32_1 = arith.constant 0 : i32
    return %arg0, %c0_i32, %c0_i32_0 : i32, i32, i32
  }
  func.func @transform_1(%arg0: i32) -> (i32, i32) {
    %c0_i32 = arith.constant 0 : i32
    %c0_i32_0 = arith.constant 0 : i32
    %c0_i32_1 = arith.constant 0 : i32
    return %c0_i32, %c0_i32_0 : i32, i32
  }
  func.func @transform_2(%arg0: i32) -> (i32, i32) {
    %c0_i32 = arith.constant 0 : i32
    %c0_i32_0 = arith.constant 0 : i32
    %c0_i32_1 = arith.constant 0 : i32
    return %c0_i32, %c0_i32_0 : i32, i32
  }
  func.func @transform_3(%arg0: i32) -> (i32, i32) {
    %c0_i32 = arith.constant 0 : i32
    %c0_i32_0 = arith.constant 0 : i32
    %c0_i32_1 = arith.constant 0 : i32
    return %c0_i32, %c0_i32_0 : i32, i32
  }
  func.func @transform_4(%arg0: i32) -> (i32, i32) {
    %c0_i32 = arith.constant 0 : i32
    %c0_i32_0 = arith.constant 0 : i32
    %c0_i32_1 = arith.constant 0 : i32
    return %c0_i32, %c0_i32_0 : i32, i32
  }
  func.func @transform_5(%arg0: i32) -> (i32, i32, i32) {
    %c0_i32 = arith.constant 0 : i32
    %c0_i32_0 = arith.constant 0 : i32
    %c0_i32_1 = arith.constant 0 : i32
    return %arg0, %c0_i32, %c0_i32_0 : i32, i32, i32
  }
  func.func @transform_6(%arg0: i32) -> (i32, i32, i32) {
    %c0_i32 = arith.constant 0 : i32
    %c0_i32_0 = arith.constant 0 : i32
    %c0_i32_1 = arith.constant 0 : i32
    return %arg0, %c0_i32, %c0_i32_0 : i32, i32, i32
  }
}

module attributes {stable_mosaic.version = 11 : i64} {
  func.func @_conv_layer_kernel(%arg0: i32, %arg1: memref<2x16x256xbf16, #tpu.memory_space<vmem>>, %arg2: memref<8x144xbf16, #tpu.memory_space<vmem>>, %arg3: memref<8x1xf32, #tpu.memory_space<vmem>>, %arg4: memref<8x1xf32, #tpu.memory_space<vmem>>, %arg5: memref<8x1xf32, #tpu.memory_space<vmem>>, %arg6: memref<2x8x256xf32, #tpu.memory_space<vmem>>, %arg7: memref<2x8x256xf32, #tpu.memory_space<vmem>>, %arg8: memref<144x512xbf16, #tpu.memory_space<vmem>>) attributes {dimension_semantics = [#tpu.dimension_semantics<parallel>], iteration_bounds = array<i64: 1>, scalar_prefetch = 0 : i64, scratch_operands = 1 : i64, tpu.core_type = #tpu.core_type<tc>, window_params = [{transform_indices = @transform_0, window_bounds = array<i64: 2, 16, 256>}, {pipeline_mode = #tpu.pipeline_mode<synchronous>, transform_indices = @transform_1, window_bounds = array<i64: 8, 144>}, {pipeline_mode = #tpu.pipeline_mode<synchronous>, transform_indices = @transform_2, window_bounds = array<i64: 8, 1>}, {pipeline_mode = #tpu.pipeline_mode<synchronous>, transform_indices = @transform_3, window_bounds = array<i64: 8, 1>}, {pipeline_mode = #tpu.pipeline_mode<synchronous>, transform_indices = @transform_4, window_bounds = array<i64: 8, 1>}, {transform_indices = @transform_5, window_bounds = array<i64: 2, 8, 256>}, {transform_indices = @transform_6, window_bounds = array<i64: 2, 8, 256>}]} {
    %0 = tpu.iota {dimensions = array<i32: 1>} : vector<1x256xi32>
    %c16_i32 = arith.constant 16 : i32
    %c0_i32 = arith.constant 0 : i32
    %1 = arith.cmpi eq, %c16_i32, %c0_i32 : i32
    %c1_i32 = arith.constant 1 : i32
    %2 = arith.select %1, %c1_i32, %c16_i32 : i32
    %3 = vector.broadcast %2 : i32 to vector<1x256xi32>
    %4 = arith.remsi %0, %3 : vector<1x256xi32>
    %c0_i32_0 = arith.constant 0 : i32
    %5 = vector.broadcast %c0_i32_0 : i32 to vector<1x256xi32>
    %6 = arith.cmpi ne, %4, %5 : vector<1x256xi32>
    %c0_i32_1 = arith.constant 0 : i32
    %7 = vector.broadcast %c0_i32_1 : i32 to vector<1x256xi32>
    %8 = arith.cmpi slt, %4, %7 : vector<1x256xi32>
    %c0_i32_2 = arith.constant 0 : i32
    %9 = arith.cmpi slt, %2, %c0_i32_2 : i32
    %10 = vector.broadcast %9 : i1 to vector<1x256xi1>
    %11 = vector.broadcast %10 : vector<1x256xi1> to vector<1x256xi1>
    %12 = arith.xori %8, %11 : vector<1x256xi1>
    %13 = arith.andi %12, %6 : vector<1x256xi1>
    %14 = vector.broadcast %2 : i32 to vector<1x256xi32>
    %15 = arith.addi %4, %14 : vector<1x256xi32>
    %16 = arith.select %13, %15, %4 : vector<1x256xi1>, vector<1x256xi32>
    %c16_i32_3 = arith.constant 16 : i32
    %17 = vector.broadcast %c16_i32_3 : i32 to vector<1x256xi32>
    %18 = arith.cmpi slt, %0, %17 : vector<1x256xi32>
    %c240_i32 = arith.constant 240 : i32
    %19 = vector.broadcast %c240_i32 : i32 to vector<1x256xi32>
    %20 = arith.cmpi sge, %0, %19 : vector<1x256xi32>
    %c0_i32_4 = arith.constant 0 : i32
    %21 = vector.broadcast %c0_i32_4 : i32 to vector<1x256xi32>
    %22 = arith.cmpi eq, %16, %21 : vector<1x256xi32>
    %c15_i32 = arith.constant 15 : i32
    %23 = vector.broadcast %c15_i32 : i32 to vector<1x256xi32>
    %24 = arith.cmpi eq, %16, %23 : vector<1x256xi32>
    %c0 = arith.constant 0 : index
    %c0_5 = arith.constant 0 : index
    %c0_6 = arith.constant 0 : index
    %25 = vector.load %arg1[%c0, %c0_5, %c0_6] : memref<2x16x256xbf16, #tpu.memory_space<vmem>>, vector<1x16x256xbf16>
    %26 = vector.shape_cast %25 : vector<1x16x256xbf16> to vector<16x256xbf16>
    %27 = vector.extract_strided_slice %26 {offsets = [0, 240], sizes = [16, 16], strides = [1, 1]} : vector<16x256xbf16> to vector<16x16xbf16>
    %28 = vector.extract_strided_slice %26 {offsets = [0, 0], sizes = [16, 240], strides = [1, 1]} : vector<16x256xbf16> to vector<16x240xbf16>
    %29 = tpu.concatenate %27, %28 in 1 : vector<16x16xbf16>, vector<16x240xbf16> -> vector<16x256xbf16>
    %30 = vector.shape_cast %18 : vector<1x256xi1> to vector<1x256xi1>
    %31 = vector.broadcast %30 : vector<1x256xi1> to vector<16x256xi1>
    %32 = arith.select %31, %26, %29 : vector<16x256xi1>, vector<16x256xbf16>
    %33 = vector.extract_strided_slice %26 {offsets = [0, 16], sizes = [16, 240], strides = [1, 1]} : vector<16x256xbf16> to vector<16x240xbf16>
    %34 = vector.extract_strided_slice %26 {offsets = [0, 0], sizes = [16, 16], strides = [1, 1]} : vector<16x256xbf16> to vector<16x16xbf16>
    %35 = tpu.concatenate %33, %34 in 1 : vector<16x240xbf16>, vector<16x16xbf16> -> vector<16x256xbf16>
    %36 = vector.shape_cast %20 : vector<1x256xi1> to vector<1x256xi1>
    %37 = vector.broadcast %36 : vector<1x256xi1> to vector<16x256xi1>
    %38 = arith.select %37, %26, %35 : vector<16x256xi1>, vector<16x256xbf16>
    %39 = vector.extract_strided_slice %32 {offsets = [0, 255], sizes = [16, 1], strides = [1, 1]} : vector<16x256xbf16> to vector<16x1xbf16>
    %40 = vector.extract_strided_slice %32 {offsets = [0, 0], sizes = [16, 255], strides = [1, 1]} : vector<16x256xbf16> to vector<16x255xbf16>
    %41 = tpu.concatenate %39, %40 in 1 : vector<16x1xbf16>, vector<16x255xbf16> -> vector<16x256xbf16>
    %42 = vector.shape_cast %22 : vector<1x256xi1> to vector<1x256xi1>
    %43 = vector.broadcast %42 : vector<1x256xi1> to vector<16x256xi1>
    %44 = arith.select %43, %32, %41 : vector<16x256xi1>, vector<16x256xbf16>
    %45 = vector.extract_strided_slice %32 {offsets = [0, 1], sizes = [16, 255], strides = [1, 1]} : vector<16x256xbf16> to vector<16x255xbf16>
    %46 = vector.extract_strided_slice %32 {offsets = [0, 0], sizes = [16, 1], strides = [1, 1]} : vector<16x256xbf16> to vector<16x1xbf16>
    %47 = tpu.concatenate %45, %46 in 1 : vector<16x255xbf16>, vector<16x1xbf16> -> vector<16x256xbf16>
    %48 = vector.shape_cast %24 : vector<1x256xi1> to vector<1x256xi1>
    %49 = vector.broadcast %48 : vector<1x256xi1> to vector<16x256xi1>
    %50 = arith.select %49, %32, %47 : vector<16x256xi1>, vector<16x256xbf16>
    %c0_7 = arith.constant 0 : index
    %c0_8 = arith.constant 0 : index
    %51 = vector.load %arg8[%c0_7, %c0_8] : memref<144x512xbf16, #tpu.memory_space<vmem>>, vector<16x256xbf16>
    tpu.vector_store %arg8[%c0_7, %c0_8], %44 {strides = array<i32>} : memref<144x512xbf16, #tpu.memory_space<vmem>>, vector<16x256xbf16>,
    %c16 = arith.constant 16 : index
    %c0_9 = arith.constant 0 : index
    %52 = vector.load %arg8[%c16, %c0_9] : memref<144x512xbf16, #tpu.memory_space<vmem>>, vector<16x256xbf16>
    tpu.vector_store %arg8[%c16, %c0_9], %32 {strides = array<i32>} : memref<144x512xbf16, #tpu.memory_space<vmem>>, vector<16x256xbf16>,
    %c32 = arith.constant 32 : index
    %c0_10 = arith.constant 0 : index
    %53 = vector.load %arg8[%c32, %c0_10] : memref<144x512xbf16, #tpu.memory_space<vmem>>, vector<16x256xbf16>
    tpu.vector_store %arg8[%c32, %c0_10], %50 {strides = array<i32>} : memref<144x512xbf16, #tpu.memory_space<vmem>>, vector<16x256xbf16>,
    %54 = vector.extract_strided_slice %26 {offsets = [0, 255], sizes = [16, 1], strides = [1, 1]} : vector<16x256xbf16> to vector<16x1xbf16>
    %55 = vector.extract_strided_slice %26 {offsets = [0, 0], sizes = [16, 255], strides = [1, 1]} : vector<16x256xbf16> to vector<16x255xbf16>
    %56 = tpu.concatenate %54, %55 in 1 : vector<16x1xbf16>, vector<16x255xbf16> -> vector<16x256xbf16>
    %57 = vector.shape_cast %22 : vector<1x256xi1> to vector<1x256xi1>
    %58 = vector.broadcast %57 : vector<1x256xi1> to vector<16x256xi1>
    %59 = arith.select %58, %26, %56 : vector<16x256xi1>, vector<16x256xbf16>
    %60 = vector.extract_strided_slice %26 {offsets = [0, 1], sizes = [16, 255], strides = [1, 1]} : vector<16x256xbf16> to vector<16x255xbf16>
    %61 = vector.extract_strided_slice %26 {offsets = [0, 0], sizes = [16, 1], strides = [1, 1]} : vector<16x256xbf16> to vector<16x1xbf16>
    %62 = tpu.concatenate %60, %61 in 1 : vector<16x255xbf16>, vector<16x1xbf16> -> vector<16x256xbf16>
    %63 = vector.shape_cast %24 : vector<1x256xi1> to vector<1x256xi1>
    %64 = vector.broadcast %63 : vector<1x256xi1> to vector<16x256xi1>
    %65 = arith.select %64, %26, %62 : vector<16x256xi1>, vector<16x256xbf16>
    %c48 = arith.constant 48 : index
    %c0_11 = arith.constant 0 : index
    %66 = vector.load %arg8[%c48, %c0_11] : memref<144x512xbf16, #tpu.memory_space<vmem>>, vector<16x256xbf16>
    tpu.vector_store %arg8[%c48, %c0_11], %59 {strides = array<i32>} : memref<144x512xbf16, #tpu.memory_space<vmem>>, vector<16x256xbf16>,
    %c64 = arith.constant 64 : index
    %c0_12 = arith.constant 0 : index
    %67 = vector.load %arg8[%c64, %c0_12] : memref<144x512xbf16, #tpu.memory_space<vmem>>, vector<16x256xbf16>
    tpu.vector_store %arg8[%c64, %c0_12], %26 {strides = array<i32>} : memref<144x512xbf16, #tpu.memory_space<vmem>>, vector<16x256xbf16>,
    %c80 = arith.constant 80 : index
    %c0_13 = arith.constant 0 : index
    %68 = vector.load %arg8[%c80, %c0_13] : memref<144x512xbf16, #tpu.memory_space<vmem>>, vector<16x256xbf16>
    tpu.vector_store %arg8[%c80, %c0_13], %65 {strides = array<i32>} : memref<144x512xbf16, #tpu.memory_space<vmem>>, vector<16x256xbf16>,
    %69 = vector.extract_strided_slice %38 {offsets = [0, 255], sizes = [16, 1], strides = [1, 1]} : vector<16x256xbf16> to vector<16x1xbf16>
    %70 = vector.extract_strided_slice %38 {offsets = [0, 0], sizes = [16, 255], strides = [1, 1]} : vector<16x256xbf16> to vector<16x255xbf16>
    %71 = tpu.concatenate %69, %70 in 1 : vector<16x1xbf16>, vector<16x255xbf16> -> vector<16x256xbf16>
    %72 = vector.shape_cast %22 : vector<1x256xi1> to vector<1x256xi1>
    %73 = vector.broadcast %72 : vector<1x256xi1> to vector<16x256xi1>
    %74 = arith.select %73, %38, %71 : vector<16x256xi1>, vector<16x256xbf16>
    %75 = vector.extract_strided_slice %38 {offsets = [0, 1], sizes = [16, 255], strides = [1, 1]} : vector<16x256xbf16> to vector<16x255xbf16>
    %76 = vector.extract_strided_slice %38 {offsets = [0, 0], sizes = [16, 1], strides = [1, 1]} : vector<16x256xbf16> to vector<16x1xbf16>
    %77 = tpu.concatenate %75, %76 in 1 : vector<16x255xbf16>, vector<16x1xbf16> -> vector<16x256xbf16>
    %78 = vector.shape_cast %24 : vector<1x256xi1> to vector<1x256xi1>
    %79 = vector.broadcast %78 : vector<1x256xi1> to vector<16x256xi1>
    %80 = arith.select %79, %38, %77 : vector<16x256xi1>, vector<16x256xbf16>
    %c96 = arith.constant 96 : index
    %c0_14 = arith.constant 0 : index
    %81 = vector.load %arg8[%c96, %c0_14] : memref<144x512xbf16, #tpu.memory_space<vmem>>, vector<16x256xbf16>
    tpu.vector_store %arg8[%c96, %c0_14], %74 {strides = array<i32>} : memref<144x512xbf16, #tpu.memory_space<vmem>>, vector<16x256xbf16>,
    %c112 = arith.constant 112 : index
    %c0_15 = arith.constant 0 : index
    %82 = vector.load %arg8[%c112, %c0_15] : memref<144x512xbf16, #tpu.memory_space<vmem>>, vector<16x256xbf16>
    tpu.vector_store %arg8[%c112, %c0_15], %38 {strides = array<i32>} : memref<144x512xbf16, #tpu.memory_space<vmem>>, vector<16x256xbf16>,
    %c128 = arith.constant 128 : index
    %c0_16 = arith.constant 0 : index
    %83 = vector.load %arg8[%c128, %c0_16] : memref<144x512xbf16, #tpu.memory_space<vmem>>, vector<16x256xbf16>
    tpu.vector_store %arg8[%c128, %c0_16], %80 {strides = array<i32>} : memref<144x512xbf16, #tpu.memory_space<vmem>>, vector<16x256xbf16>,
    %c1 = arith.constant 1 : index
    %c0_17 = arith.constant 0 : index
    %c0_18 = arith.constant 0 : index
    %84 = vector.load %arg1[%c1, %c0_17, %c0_18] : memref<2x16x256xbf16, #tpu.memory_space<vmem>>, vector<1x16x256xbf16>
    %85 = vector.shape_cast %84 : vector<1x16x256xbf16> to vector<16x256xbf16>
    %86 = vector.extract_strided_slice %85 {offsets = [0, 240], sizes = [16, 16], strides = [1, 1]} : vector<16x256xbf16> to vector<16x16xbf16>
    %87 = vector.extract_strided_slice %85 {offsets = [0, 0], sizes = [16, 240], strides = [1, 1]} : vector<16x256xbf16> to vector<16x240xbf16>
    %88 = tpu.concatenate %86, %87 in 1 : vector<16x16xbf16>, vector<16x240xbf16> -> vector<16x256xbf16>
    %89 = vector.shape_cast %18 : vector<1x256xi1> to vector<1x256xi1>
    %90 = vector.broadcast %89 : vector<1x256xi1> to vector<16x256xi1>
    %91 = arith.select %90, %85, %88 : vector<16x256xi1>, vector<16x256xbf16>
    %92 = vector.extract_strided_slice %85 {offsets = [0, 16], sizes = [16, 240], strides = [1, 1]} : vector<16x256xbf16> to vector<16x240xbf16>
    %93 = vector.extract_strided_slice %85 {offsets = [0, 0], sizes = [16, 16], strides = [1, 1]} : vector<16x256xbf16> to vector<16x16xbf16>
    %94 = tpu.concatenate %92, %93 in 1 : vector<16x240xbf16>, vector<16x16xbf16> -> vector<16x256xbf16>
    %95 = vector.shape_cast %20 : vector<1x256xi1> to vector<1x256xi1>
    %96 = vector.broadcast %95 : vector<1x256xi1> to vector<16x256xi1>
    %97 = arith.select %96, %85, %94 : vector<16x256xi1>, vector<16x256xbf16>
    %98 = vector.extract_strided_slice %91 {offsets = [0, 255], sizes = [16, 1], strides = [1, 1]} : vector<16x256xbf16> to vector<16x1xbf16>
    %99 = vector.extract_strided_slice %91 {offsets = [0, 0], sizes = [16, 255], strides = [1, 1]} : vector<16x256xbf16> to vector<16x255xbf16>
    %100 = tpu.concatenate %98, %99 in 1 : vector<16x1xbf16>, vector<16x255xbf16> -> vector<16x256xbf16>
    %101 = vector.shape_cast %22 : vector<1x256xi1> to vector<1x256xi1>
    %102 = vector.broadcast %101 : vector<1x256xi1> to vector<16x256xi1>
    %103 = arith.select %102, %91, %100 : vector<16x256xi1>, vector<16x256xbf16>
    %104 = vector.extract_strided_slice %91 {offsets = [0, 1], sizes = [16, 255], strides = [1, 1]} : vector<16x256xbf16> to vector<16x255xbf16>
    %105 = vector.extract_strided_slice %91 {offsets = [0, 0], sizes = [16, 1], strides = [1, 1]} : vector<16x256xbf16> to vector<16x1xbf16>
    %106 = tpu.concatenate %104, %105 in 1 : vector<16x255xbf16>, vector<16x1xbf16> -> vector<16x256xbf16>
    %107 = vector.shape_cast %24 : vector<1x256xi1> to vector<1x256xi1>
    %108 = vector.broadcast %107 : vector<1x256xi1> to vector<16x256xi1>
    %109 = arith.select %108, %91, %106 : vector<16x256xi1>, vector<16x256xbf16>
    %c0_19 = arith.constant 0 : index
    %c256 = arith.constant 256 : index
    %110 = vector.load %arg8[%c0_19, %c256] : memref<144x512xbf16, #tpu.memory_space<vmem>>, vector<16x256xbf16>
    tpu.vector_store %arg8[%c0_19, %c256], %103 {strides = array<i32>} : memref<144x512xbf16, #tpu.memory_space<vmem>>, vector<16x256xbf16>,
    %c16_20 = arith.constant 16 : index
    %c256_21 = arith.constant 256 : index
    %111 = vector.load %arg8[%c16_20, %c256_21] : memref<144x512xbf16, #tpu.memory_space<vmem>>, vector<16x256xbf16>
    tpu.vector_store %arg8[%c16_20, %c256_21], %91 {strides = array<i32>} : memref<144x512xbf16, #tpu.memory_space<vmem>>, vector<16x256xbf16>,
    %c32_22 = arith.constant 32 : index
    %c256_23 = arith.constant 256 : index
    %112 = vector.load %arg8[%c32_22, %c256_23] : memref<144x512xbf16, #tpu.memory_space<vmem>>, vector<16x256xbf16>
    tpu.vector_store %arg8[%c32_22, %c256_23], %109 {strides = array<i32>} : memref<144x512xbf16, #tpu.memory_space<vmem>>, vector<16x256xbf16>,
    %113 = vector.extract_strided_slice %85 {offsets = [0, 255], sizes = [16, 1], strides = [1, 1]} : vector<16x256xbf16> to vector<16x1xbf16>
    %114 = vector.extract_strided_slice %85 {offsets = [0, 0], sizes = [16, 255], strides = [1, 1]} : vector<16x256xbf16> to vector<16x255xbf16>
    %115 = tpu.concatenate %113, %114 in 1 : vector<16x1xbf16>, vector<16x255xbf16> -> vector<16x256xbf16>
    %116 = vector.shape_cast %22 : vector<1x256xi1> to vector<1x256xi1>
    %117 = vector.broadcast %116 : vector<1x256xi1> to vector<16x256xi1>
    %118 = arith.select %117, %85, %115 : vector<16x256xi1>, vector<16x256xbf16>
    %119 = vector.extract_strided_slice %85 {offsets = [0, 1], sizes = [16, 255], strides = [1, 1]} : vector<16x256xbf16> to vector<16x255xbf16>
    %120 = vector.extract_strided_slice %85 {offsets = [0, 0], sizes = [16, 1], strides = [1, 1]} : vector<16x256xbf16> to vector<16x1xbf16>
    %121 = tpu.concatenate %119, %120 in 1 : vector<16x255xbf16>, vector<16x1xbf16> -> vector<16x256xbf16>
    %122 = vector.shape_cast %24 : vector<1x256xi1> to vector<1x256xi1>
    %123 = vector.broadcast %122 : vector<1x256xi1> to vector<16x256xi1>
    %124 = arith.select %123, %85, %121 : vector<16x256xi1>, vector<16x256xbf16>
    %c48_24 = arith.constant 48 : index
    %c256_25 = arith.constant 256 : index
    %125 = vector.load %arg8[%c48_24, %c256_25] : memref<144x512xbf16, #tpu.memory_space<vmem>>, vector<16x256xbf16>
    tpu.vector_store %arg8[%c48_24, %c256_25], %118 {strides = array<i32>} : memref<144x512xbf16, #tpu.memory_space<vmem>>, vector<16x256xbf16>,
    %c64_26 = arith.constant 64 : index
    %c256_27 = arith.constant 256 : index
    %126 = vector.load %arg8[%c64_26, %c256_27] : memref<144x512xbf16, #tpu.memory_space<vmem>>, vector<16x256xbf16>
    tpu.vector_store %arg8[%c64_26, %c256_27], %85 {strides = array<i32>} : memref<144x512xbf16, #tpu.memory_space<vmem>>, vector<16x256xbf16>,
    %c80_28 = arith.constant 80 : index
    %c256_29 = arith.constant 256 : index
    %127 = vector.load %arg8[%c80_28, %c256_29] : memref<144x512xbf16, #tpu.memory_space<vmem>>, vector<16x256xbf16>
    tpu.vector_store %arg8[%c80_28, %c256_29], %124 {strides = array<i32>} : memref<144x512xbf16, #tpu.memory_space<vmem>>, vector<16x256xbf16>,
    %128 = vector.extract_strided_slice %97 {offsets = [0, 255], sizes = [16, 1], strides = [1, 1]} : vector<16x256xbf16> to vector<16x1xbf16>
    %129 = vector.extract_strided_slice %97 {offsets = [0, 0], sizes = [16, 255], strides = [1, 1]} : vector<16x256xbf16> to vector<16x255xbf16>
    %130 = tpu.concatenate %128, %129 in 1 : vector<16x1xbf16>, vector<16x255xbf16> -> vector<16x256xbf16>
    %131 = vector.shape_cast %22 : vector<1x256xi1> to vector<1x256xi1>
    %132 = vector.broadcast %131 : vector<1x256xi1> to vector<16x256xi1>
    %133 = arith.select %132, %97, %130 : vector<16x256xi1>, vector<16x256xbf16>
    %134 = vector.extract_strided_slice %97 {offsets = [0, 1], sizes = [16, 255], strides = [1, 1]} : vector<16x256xbf16> to vector<16x255xbf16>
    %135 = vector.extract_strided_slice %97 {offsets = [0, 0], sizes = [16, 1], strides = [1, 1]} : vector<16x256xbf16> to vector<16x1xbf16>
    %136 = tpu.concatenate %134, %135 in 1 : vector<16x255xbf16>, vector<16x1xbf16> -> vector<16x256xbf16>
    %137 = vector.shape_cast %24 : vector<1x256xi1> to vector<1x256xi1>
    %138 = vector.broadcast %137 : vector<1x256xi1> to vector<16x256xi1>
    %139 = arith.select %138, %97, %136 : vector<16x256xi1>, vector<16x256xbf16>
    %c96_30 = arith.constant 96 : index
    %c256_31 = arith.constant 256 : index
    %140 = vector.load %arg8[%c96_30, %c256_31] : memref<144x512xbf16, #tpu.memory_space<vmem>>, vector<16x256xbf16>
    tpu.vector_store %arg8[%c96_30, %c256_31], %133 {strides = array<i32>} : memref<144x512xbf16, #tpu.memory_space<vmem>>, vector<16x256xbf16>,
    %c112_32 = arith.constant 112 : index
    %c256_33 = arith.constant 256 : index
    %141 = vector.load %arg8[%c112_32, %c256_33] : memref<144x512xbf16, #tpu.memory_space<vmem>>, vector<16x256xbf16>
    tpu.vector_store %arg8[%c112_32, %c256_33], %97 {strides = array<i32>} : memref<144x512xbf16, #tpu.memory_space<vmem>>, vector<16x256xbf16>,
    %c128_34 = arith.constant 128 : index
    %c256_35 = arith.constant 256 : index
    %142 = vector.load %arg8[%c128_34, %c256_35] : memref<144x512xbf16, #tpu.memory_space<vmem>>, vector<16x256xbf16>
    tpu.vector_store %arg8[%c128_34, %c256_35], %139 {strides = array<i32>} : memref<144x512xbf16, #tpu.memory_space<vmem>>, vector<16x256xbf16>,
    %c0_36 = arith.constant 0 : index
    %c0_37 = arith.constant 0 : index
    %143 = vector.load %arg2[%c0_36, %c0_37] : memref<8x144xbf16, #tpu.memory_space<vmem>>, vector<8x144xbf16>
    %c0_38 = arith.constant 0 : index
    %c0_39 = arith.constant 0 : index
    %144 = vector.load %arg8[%c0_38, %c0_39] : memref<144x512xbf16, #tpu.memory_space<vmem>>, vector<144x512xbf16>
    %cst = arith.constant dense<0.000000e+00> : vector<8x512xf32>
    %145 = tpu.matmul %143, %144, %cst {dimension_numbers = #tpu.dot_dimension_numbers<[1], [0], [0], [1], [0, 0, 1, 1], [], []>} : vector<8x144xbf16>, vector<144x512xbf16>, vector<8x512xf32> -> vector<8x512xf32>
    %c0_40 = arith.constant 0 : index
    %c0_41 = arith.constant 0 : index
    %146 = vector.load %arg3[%c0_40, %c0_41] : memref<8x1xf32, #tpu.memory_space<vmem>>, vector<8x1xf32>
    %147 = vector.broadcast %146 : vector<8x1xf32> to vector<8x512xf32>
    %148 = arith.addf %145, %147 : vector<8x512xf32>
    %149 = vector.extract_strided_slice %148 {offsets = [0, 0], sizes = [8, 256], strides = [1, 1]} : vector<8x512xf32> to vector<8x256xf32>
    %150 = vector.shape_cast %149 : vector<8x256xf32> to vector<1x8x256xf32>
    %cst_42 = arith.constant dense<0.000000e+00> : vector<1xf32>
    %151 = vector.multi_reduction <add>, %150, %cst_42 [1, 2] : vector<1x8x256xf32> to vector<1xf32>
    %152 = vector.shape_cast %151 : vector<1xf32> to vector<1x1x1xf32>
    %153 = vector.extract %152[0, 0, 0] : f32 from vector<1x1x1xf32>
    %154 = vector.broadcast %153 : f32 to vector<1x1xf32>
    %cst_43 = arith.constant 2.048000e+03 : f32
    %155 = vector.broadcast %cst_43 : f32 to vector<1x1xf32>
    %156 = arith.divf %154, %155 : vector<1x1xf32>
    %157 = vector.broadcast %156 : vector<1x1xf32> to vector<8x256xf32>
    %158 = arith.subf %149, %157 : vector<8x256xf32>
    %159 = arith.mulf %158, %158 : vector<8x256xf32>
    %160 = vector.shape_cast %159 : vector<8x256xf32> to vector<1x8x256xf32>
    %cst_44 = arith.constant dense<0.000000e+00> : vector<1xf32>
    %161 = vector.multi_reduction <add>, %160, %cst_44 [1, 2] : vector<1x8x256xf32> to vector<1xf32>
    %162 = vector.shape_cast %161 : vector<1xf32> to vector<1x1x1xf32>
    %163 = vector.extract %162[0, 0, 0] : f32 from vector<1x1x1xf32>
    %164 = vector.broadcast %163 : f32 to vector<1x1xf32>
    %cst_45 = arith.constant 2.048000e+03 : f32
    %165 = vector.broadcast %cst_45 : f32 to vector<1x1xf32>
    %166 = arith.divf %164, %165 : vector<1x1xf32>
    %cst_46 = arith.constant 9.99999974E-6 : f32
    %167 = vector.broadcast %cst_46 : f32 to vector<1x1xf32>
    %168 = arith.addf %166, %167 : vector<1x1xf32>
    %169 = math.rsqrt %168 : vector<1x1xf32>
    %170 = vector.broadcast %169 : vector<1x1xf32> to vector<8x256xf32>
    %171 = arith.mulf %158, %170 : vector<8x256xf32>
    %c0_47 = arith.constant 0 : index
    %c0_48 = arith.constant 0 : index
    %172 = vector.load %arg4[%c0_47, %c0_48] : memref<8x1xf32, #tpu.memory_space<vmem>>, vector<8x1xf32>
    %173 = vector.broadcast %172 : vector<8x1xf32> to vector<8x256xf32>
    %174 = arith.mulf %171, %173 : vector<8x256xf32>
    %c0_49 = arith.constant 0 : index
    %c0_50 = arith.constant 0 : index
    %175 = vector.load %arg5[%c0_49, %c0_50] : memref<8x1xf32, #tpu.memory_space<vmem>>, vector<8x1xf32>
    %176 = vector.broadcast %175 : vector<8x1xf32> to vector<8x256xf32>
    %177 = arith.addf %174, %176 : vector<8x256xf32>
    %cst_51 = arith.constant 0.000000e+00 : f32
    %178 = vector.broadcast %cst_51 : f32 to vector<8x256xf32>
    %179 = arith.cmpf oge, %177, %178 : vector<8x256xf32>
    %cst_52 = arith.constant 2.000000e-02 : f32
    %180 = vector.broadcast %cst_52 : f32 to vector<8x256xf32>
    %181 = arith.mulf %180, %177 : vector<8x256xf32>
    %182 = arith.select %179, %177, %181 : vector<8x256xi1>, vector<8x256xf32>
    %c0_53 = arith.constant 0 : index
    %c0_54 = arith.constant 0 : index
    %c0_55 = arith.constant 0 : index
    %183 = vector.load %arg6[%c0_53, %c0_54, %c0_55] : memref<2x8x256xf32, #tpu.memory_space<vmem>>, vector<1x8x256xf32>
    %184 = vector.shape_cast %183 : vector<1x8x256xf32> to vector<8x256xf32>
    %185 = vector.shape_cast %182 : vector<8x256xf32> to vector<1x8x256xf32>
    tpu.vector_store %arg6[%c0_53, %c0_54, %c0_55], %185 {strides = array<i32>} : memref<2x8x256xf32, #tpu.memory_space<vmem>>, vector<1x8x256xf32>,
    %cst_56 = arith.constant 0.000000e+00 : f32
    %186 = vector.broadcast %cst_56 : f32 to vector<8x256xf32>
    %187 = arith.cmpf oge, %149, %186 : vector<8x256xf32>
    %cst_57 = arith.constant 2.000000e-02 : f32
    %188 = vector.broadcast %cst_57 : f32 to vector<8x256xf32>
    %189 = arith.mulf %188, %149 : vector<8x256xf32>
    %190 = arith.select %187, %149, %189 : vector<8x256xi1>, vector<8x256xf32>
    %c0_58 = arith.constant 0 : index
    %c0_59 = arith.constant 0 : index
    %c0_60 = arith.constant 0 : index
    %191 = vector.load %arg7[%c0_58, %c0_59, %c0_60] : memref<2x8x256xf32, #tpu.memory_space<vmem>>, vector<1x8x256xf32>
    %192 = vector.shape_cast %191 : vector<1x8x256xf32> to vector<8x256xf32>
    %193 = vector.shape_cast %190 : vector<8x256xf32> to vector<1x8x256xf32>
    tpu.vector_store %arg7[%c0_58, %c0_59, %c0_60], %193 {strides = array<i32>} : memref<2x8x256xf32, #tpu.memory_space<vmem>>, vector<1x8x256xf32>,
    %194 = vector.extract_strided_slice %148 {offsets = [0, 256], sizes = [8, 256], strides = [1, 1]} : vector<8x512xf32> to vector<8x256xf32>
    %195 = vector.shape_cast %194 : vector<8x256xf32> to vector<1x8x256xf32>
    %cst_61 = arith.constant dense<0.000000e+00> : vector<1xf32>
    %196 = vector.multi_reduction <add>, %195, %cst_61 [1, 2] : vector<1x8x256xf32> to vector<1xf32>
    %197 = vector.shape_cast %196 : vector<1xf32> to vector<1x1x1xf32>
    %198 = vector.extract %197[0, 0, 0] : f32 from vector<1x1x1xf32>
    %199 = vector.broadcast %198 : f32 to vector<1x1xf32>
    %cst_62 = arith.constant 2.048000e+03 : f32
    %200 = vector.broadcast %cst_62 : f32 to vector<1x1xf32>
    %201 = arith.divf %199, %200 : vector<1x1xf32>
    %202 = vector.broadcast %201 : vector<1x1xf32> to vector<8x256xf32>
    %203 = arith.subf %194, %202 : vector<8x256xf32>
    %204 = arith.mulf %203, %203 : vector<8x256xf32>
    %205 = vector.shape_cast %204 : vector<8x256xf32> to vector<1x8x256xf32>
    %cst_63 = arith.constant dense<0.000000e+00> : vector<1xf32>
    %206 = vector.multi_reduction <add>, %205, %cst_63 [1, 2] : vector<1x8x256xf32> to vector<1xf32>
    %207 = vector.shape_cast %206 : vector<1xf32> to vector<1x1x1xf32>
    %208 = vector.extract %207[0, 0, 0] : f32 from vector<1x1x1xf32>
    %209 = vector.broadcast %208 : f32 to vector<1x1xf32>
    %cst_64 = arith.constant 2.048000e+03 : f32
    %210 = vector.broadcast %cst_64 : f32 to vector<1x1xf32>
    %211 = arith.divf %209, %210 : vector<1x1xf32>
    %cst_65 = arith.constant 9.99999974E-6 : f32
    %212 = vector.broadcast %cst_65 : f32 to vector<1x1xf32>
    %213 = arith.addf %211, %212 : vector<1x1xf32>
    %214 = math.rsqrt %213 : vector<1x1xf32>
    %215 = vector.broadcast %214 : vector<1x1xf32> to vector<8x256xf32>
    %216 = arith.mulf %203, %215 : vector<8x256xf32>
    %c0_66 = arith.constant 0 : index
    %c0_67 = arith.constant 0 : index
    %217 = vector.load %arg4[%c0_66, %c0_67] : memref<8x1xf32, #tpu.memory_space<vmem>>, vector<8x1xf32>
    %218 = vector.broadcast %217 : vector<8x1xf32> to vector<8x256xf32>
    %219 = arith.mulf %216, %218 : vector<8x256xf32>
    %c0_68 = arith.constant 0 : index
    %c0_69 = arith.constant 0 : index
    %220 = vector.load %arg5[%c0_68, %c0_69] : memref<8x1xf32, #tpu.memory_space<vmem>>, vector<8x1xf32>
    %221 = vector.broadcast %220 : vector<8x1xf32> to vector<8x256xf32>
    %222 = arith.addf %219, %221 : vector<8x256xf32>
    %cst_70 = arith.constant 0.000000e+00 : f32
    %223 = vector.broadcast %cst_70 : f32 to vector<8x256xf32>
    %224 = arith.cmpf oge, %222, %223 : vector<8x256xf32>
    %cst_71 = arith.constant 2.000000e-02 : f32
    %225 = vector.broadcast %cst_71 : f32 to vector<8x256xf32>
    %226 = arith.mulf %225, %222 : vector<8x256xf32>
    %227 = arith.select %224, %222, %226 : vector<8x256xi1>, vector<8x256xf32>
    %c1_72 = arith.constant 1 : index
    %c0_73 = arith.constant 0 : index
    %c0_74 = arith.constant 0 : index
    %228 = vector.load %arg6[%c1_72, %c0_73, %c0_74] : memref<2x8x256xf32, #tpu.memory_space<vmem>>, vector<1x8x256xf32>
    %229 = vector.shape_cast %228 : vector<1x8x256xf32> to vector<8x256xf32>
    %230 = vector.shape_cast %227 : vector<8x256xf32> to vector<1x8x256xf32>
    tpu.vector_store %arg6[%c1_72, %c0_73, %c0_74], %230 {strides = array<i32>} : memref<2x8x256xf32, #tpu.memory_space<vmem>>, vector<1x8x256xf32>,
    %cst_75 = arith.constant 0.000000e+00 : f32
    %231 = vector.broadcast %cst_75 : f32 to vector<8x256xf32>
    %232 = arith.cmpf oge, %194, %231 : vector<8x256xf32>
    %cst_76 = arith.constant 2.000000e-02 : f32
    %233 = vector.broadcast %cst_76 : f32 to vector<8x256xf32>
    %234 = arith.mulf %233, %194 : vector<8x256xf32>
    %235 = arith.select %232, %194, %234 : vector<8x256xi1>, vector<8x256xf32>
    %c1_77 = arith.constant 1 : index
    %c0_78 = arith.constant 0 : index
    %c0_79 = arith.constant 0 : index
    %236 = vector.load %arg7[%c1_77, %c0_78, %c0_79] : memref<2x8x256xf32, #tpu.memory_space<vmem>>, vector<1x8x256xf32>
    %237 = vector.shape_cast %236 : vector<1x8x256xf32> to vector<8x256xf32>
    %238 = vector.shape_cast %235 : vector<8x256xf32> to vector<1x8x256xf32>
    tpu.vector_store %arg7[%c1_77, %c0_78, %c0_79], %238 {strides = array<i32>} : memref<2x8x256xf32, #tpu.memory_space<vmem>>, vector<1x8x256xf32>,
    return
  }
  func.func @transform_0(%arg0: i32) -> (i32, i32, i32) {
    %c0_i32 = arith.constant 0 : i32
    %c0_i32_0 = arith.constant 0 : i32
    %c0_i32_1 = arith.constant 0 : i32
    return %arg0, %c0_i32, %c0_i32_0 : i32, i32, i32
  }
  func.func @transform_1(%arg0: i32) -> (i32, i32) {
    %c0_i32 = arith.constant 0 : i32
    %c0_i32_0 = arith.constant 0 : i32
    %c0_i32_1 = arith.constant 0 : i32
    return %c0_i32, %c0_i32_0 : i32, i32
  }
  func.func @transform_2(%arg0: i32) -> (i32, i32) {
    %c0_i32 = arith.constant 0 : i32
    %c0_i32_0 = arith.constant 0 : i32
    %c0_i32_1 = arith.constant 0 : i32
    return %c0_i32, %c0_i32_0 : i32, i32
  }
  func.func @transform_3(%arg0: i32) -> (i32, i32) {
    %c0_i32 = arith.constant 0 : i32
    %c0_i32_0 = arith.constant 0 : i32
    %c0_i32_1 = arith.constant 0 : i32
    return %c0_i32, %c0_i32_0 : i32, i32
  }
  func.func @transform_4(%arg0: i32) -> (i32, i32) {
    %c0_i32 = arith.constant 0 : i32
    %c0_i32_0 = arith.constant 0 : i32
    %c0_i32_1 = arith.constant 0 : i32
    return %c0_i32, %c0_i32_0 : i32, i32
  }
  func.func @transform_5(%arg0: i32) -> (i32, i32, i32) {
    %c0_i32 = arith.constant 0 : i32
    %c0_i32_0 = arith.constant 0 : i32
    %c0_i32_1 = arith.constant 0 : i32
    return %arg0, %c0_i32, %c0_i32_0 : i32, i32, i32
  }
  func.func @transform_6(%arg0: i32) -> (i32, i32, i32) {
    %c0_i32 = arith.constant 0 : i32
    %c0_i32_0 = arith.constant 0 : i32
    %c0_i32_1 = arith.constant 0 : i32
    return %arg0, %c0_i32, %c0_i32_0 : i32, i32, i32
  }
}

</mosaic_0001>

<bundles_post_ra>
// kernel: tpu_custom_call.1
= control target key start
LH: loop header
LB: loop body
LE: loop exit
PB: predicated region body
PF: predicated region fallthrough
CT: control target
= control target key end

     0   :  { %12 = vsyncpa [#allocation4], 0  ;;  %s1515_s0 = inlined_call_operand.hbm [shape: bf16[2,16,256], index: 0, kind: input, shape index: {}]   ;;  %s1516_s1 = inlined_call_operand.vmem [shape: bf16[8,144], index: 1, kind: input, shape index: {}]   ;;  %s1517_s2 = inlined_call_operand.vmem [shape: f32[8,1], index: 2, kind: input, shape index: {}]   ;;  %s1518_s3 = inlined_call_operand.vmem [shape: f32[8,1], index: 3, kind: input, shape index: {}]   ;;  %s1519_s4 = inlined_call_operand.vmem [shape: f32[8,1], index: 4, kind: input, shape index: {}]   ;;  %s1520_s5 = inlined_call_operand.hbm [shape: f32[2,8,256], index: 5, kind: output, shape index: {0}]   ;;  %s1521_s6 = inlined_call_operand.hbm [shape: f32[2,8,256], index: 6, kind: output, shape index: {1}]  }
   0x1   :  { %13 = vsyncpa [#allocation5], 0 }
   0x2   :  { %14 = vsyncpa [#allocation8], 0  ;;  %s1155_s21 = smov [#allocation3]  }
   0x3   :  { %s20_s22 = sshll.u32 %s1155_s21, 4  ;;  %s21_s22 = int_to_ptr.vmem [resolvable:$true] %s20_s22 }
   0x4   :  { %s1097_s23 = scalar_lea.vmem %s21_s22, 512  ;;  %p1102_p1 = scmp.lt.s32.totalorder %s21_s22, %s21_s22 }
   0x5   :  { %p1098_p0 = scmp.ne.s32.totalorder %s21_s22, %s1097_s23  ;;  %p1103_p2 = scmp.lt.s32.totalorder %s1097_s23, %s1097_s23 }
   0x7   :  { %p1104_p3 = por %p1103_p2, %p1102_p1 }
   0x9   :  { %p1105_p4 = pnand %p1104_p3, %p1098_p0 }
   0xb   :  { %1108 = shalt.err (!%p1105_p4)
}
   0xc   :  { %s1156_s24 = smov 128   ;;  %s1157_s25 = smov 8  }
   0xd   :  { %26 = dma.hbm_to_vmem [thread:$0]  %s1515_s0, 512, %s21_s22, [#allocation4], %s1156_s24, %s1156_s24, %s1157_s25  }
   0xe   :  { %1149 = dma.done.wait [#allocation4], 512  }
   0xf   :  { %1150 = vsyncadd [#allocation4], 4294966784  ;;  %v39_v0 = vlaneseq  ;;  %v1205_v5 = vld [vmem:[#allocation3] sm:$0xff]  ;;  %v1207_v6 = vld [vmem:[#allocation3 + $0x8] sm:$0xff]  ;;  %s1158_s0 = smov 112   ;;  %s1159_s28 = smov 16  }
  0x10   :  { %v1211_v7 = vcombine.low %v1205_v5, %v1207_v6  ;;  %v1215_v8 = vcombine.high %v1205_v5, %v1207_v6  ;;  %vm114_vm7 = vcmask 916480   ;;  %vm1160_vm8 = vmmov 0   ;;  %s1161_s29 = smov 1   ;;  %s1162_s30 = smov 127   ;;  %v1297_v33 = vld [vmem:[#allocation3 + $0x10] sm:$0xff]  ;;  %v1299_v34 = vld [vmem:[#allocation3 + $0x18] sm:$0xff] }
  0x11   :  { %v40_v1 = vand.u32 127, %v39_v0  ;;  %vm88_vm10 = vcmask 130048   ;;  %v1305_v35 = vcombine.high %v1297_v33, %v1299_v34  ;;  %v1309_v36 = vcombine.low %v1297_v33, %v1299_v34  ;;  %v1314_v37 = vld [vmem:[%s1516_s1] sm:$0xff]  ;;  %s1164_s14 = smov [#allocation7]  }
  0x12   :  { %110 = vrot.lane.b32.xlu0 %v1211_v7, %s1158_s0  ;;  %81 = vrot.lane.b32.xlu1 %v1215_v8, %s1159_s28  ;;  %v1018_v38 = vcombine.high %v1314_v37, %v1314_v37  ;;  %v1163_v39 = vmov 0   ;;  %vm148_vm13 = vcmask 7168   ;;  %vm174_vm14 = vcmask 1039360   ;;  %s957_s15 = sshll.u32 %s1164_s14, 4  ;;  %s958_s15 = int_to_ptr.vmem [resolvable:$true] %s957_s15 }
  0x13   :  { %v41_v2 = vadd.s32 128, %v40_v1  ;;  %v46_v3 = vand.u32 15, %v40_v1  ;;  %vm66_vm11 = vcmp.lt.s32.totalorder %v40_v1, 16  ;;  %1077 = vset.pattern.permute.xlu0 %v1163_v39  ;;  %1078 = vset.pattern.permute.xlu1 %v1163_v39  ;;  %s1109_s16 = scalar_lea.vmem %s958_s15, 512  ;;  %p1114_p6 = scmp.lt.s32.totalorder %s958_s15, %s958_s15 }
  0x14   :  { %vm1259_vm12 = vmpackc.low %vm1160_vm8, %vm66_vm11  ;;  %1055 = vmatprep.mubr.msk.bf16.mxu0 %vm88_vm10, %v1018_v38  ;;  %1056 = vmatprep.mubr.msk.bf16.mxu1 %vm88_vm10, %v1018_v38  ;;  %p1110_p5 = scmp.ne.s32.totalorder %s958_s15, %s1109_s16  ;;  %p1115_p7 = scmp.lt.s32.totalorder %s1109_s16, %s1109_s16 }
  0x15   :  { %v53_v4 = vand.u32 15, %v41_v2  ;;  %vm70_vm0 = vcmp.eq.s32.totalorder %v46_v3, 0  ;;  %vm72_vm1 = vcmp.eq.s32.totalorder %v46_v3, 15  ;;  %vm69_vm6 = vcmp.ge.s32.totalorder %v41_v2, 240 }
  0x16   :  { %112 = vrot.lane.b32.xlu0 %v1215_v8, %s1158_s0  ;;  %86 = vrot.lane.b32.xlu1 %v1211_v7, %s1159_s28  ;;  %vm1234_vm9 = vmpackc.low %vm69_vm6, %vm1160_vm8  ;;  %p1116_p8 = por %p1115_p7, %p1114_p6 }
  0x17   :  { %vm71_vm2 = vcmp.eq.s32.totalorder %v53_v4, 0  ;;  %vm73_vm3 = vcmp.eq.s32.totalorder %v53_v4, 15 }
  0x18   :  { %vm1217_vm4 = vmpackc.low %vm71_vm2, %vm70_vm0  ;;  %p1117_p9 = pnand %p1116_p8, %p1110_p5 }
  0x19   :  { %vm1225_vm5 = vmpackc.low %vm73_vm3, %vm72_vm1 }
  0x84   :  { %v111_v11 = vpop.permute.xlu0 %110  ;;  %v82_v12 = vpop.permute.xlu1 %81 }
  0x88   :  { %v113_v13 = vpop.permute.xlu0 %112  ;;  %v87_v19 = vpop.permute.xlu1 %86 }
  0x89   :  { %v115_v15 = vsel %vm114_vm7, %v111_v11, %v113_v13  ;;  %v119_v16 = vsel %vm114_vm7, %v113_v13, %v111_v11  ;;  %v89_v24 = vsel %vm88_vm10, %v87_v19, %v82_v12  ;;  %v93_v25 = vsel %vm88_vm10, %v82_v12, %v87_v19 }
  0x8a   :  { %v977_v17 = vcombine.low %v115_v15, %v119_v16  ;;  %v978_v18 = vcombine.high %v115_v15, %v119_v16  ;;  %v975_v26 = vcombine.low %v93_v25, %v89_v24  ;;  %v976_v27 = vcombine.high %v93_v25, %v89_v24 }
  0x8c   :  { %v1243_v20 = vsel %vm1234_vm9, %v1205_v5, %v977_v17  ;;  %v1248_v21 = vsel %vm1234_vm9, %v1207_v6, %v978_v18  ;;  %v1270_v29 = vsel %vm1259_vm12, %v1205_v5, %v975_v26  ;;  %v1275_v30 = vsel %vm1259_vm12, %v1207_v6, %v976_v27 }
  0x8d   :  { %v990_v22 = vcombine.low %v1243_v20, %v1248_v21  ;;  %v989_v23 = vcombine.high %v1243_v20, %v1248_v21  ;;  %v1283_v31 = vcombine.high %v1270_v29, %v1275_v30  ;;  %v1287_v32 = vcombine.low %v1270_v29, %v1275_v30 }
  0x8f   :  { %256 = vrot.lane.b32.xlu1 %v990_v22, %s1161_s29  ;;  %251 = vrot.lane.b32.xlu0 %v989_v23, %s1161_s29 }
  0x90   :  { %727 = vmatprep.subr.bf16.mxu0 %v989_v23 }
  0x91   :  { %728 = vmatpush1.bf16.msra.mxu0 %v990_v22 }
  0x93   :  { %223 = vrot.lane.b32.xlu1 %v1215_v8, %s1162_s30  ;;  %221 = vrot.lane.b32.xlu0 %v1211_v7, %s1162_s30 }
  0x97   :  { %204 = vrot.lane.b32.xlu1 %v1211_v7, %s1161_s29  ;;  %202 = vrot.lane.b32.xlu0 %v1215_v8, %s1161_s29 }
  0x9b   :  { %172 = vrot.lane.b32.xlu1 %v1283_v31, %s1162_s30  ;;  %170 = vrot.lane.b32.xlu0 %v1287_v32, %s1162_s30 }
  0x9f   :  { %146 = vrot.lane.b32.xlu1 %v1287_v32, %s1161_s29  ;;  %141 = vrot.lane.b32.xlu0 %v1283_v31, %s1161_s29 }
  0xa3   :  { %275 = vrot.lane.b32.xlu1 %v989_v23, %s1162_s30  ;;  %273 = vrot.lane.b32.xlu0 %v990_v22, %s1162_s30 }
  0xa7   :  { %330 = vrot.lane.b32.xlu1 %v1305_v35, %s1158_s0  ;;  %328 = vrot.lane.b32.xlu0 %v1309_v36, %s1158_s0 }
  0xab   :  { %311 = vrot.lane.b32.xlu1 %v1309_v36, %s1159_s28  ;;  %306 = vrot.lane.b32.xlu0 %v1305_v35, %s1159_s28 }
 0x101   :  { %v257_v40 = vpop.permute.xlu1 %256  ;;  %v252_v41 = vpop.permute.xlu0 %251 }
 0x102   :  { %v258_v42 = vsel %vm148_vm13, %v257_v40, %v252_v41  ;;  %v261_v43 = vsel %vm148_vm13, %v252_v41, %v257_v40 }
 0x103   :  { %v991_v44 = vcombine.low %v261_v43, %v258_v42  ;;  %v992_v45 = vcombine.high %v261_v43, %v258_v42 }
 0x105   :  { %v224_v46 = vpop.permute.xlu1 %223  ;;  %v222_v47 = vpop.permute.xlu0 %221  ;;  %v271_v48 = vsel %vm1217_vm4, %v1243_v20, %v991_v44  ;;  %v272_v49 = vsel %vm1217_vm4, %v1248_v21, %v992_v45 }
 0x106   :  { %v225_v50 = vsel %vm174_vm14, %v222_v47, %v224_v46  ;;  %v228_v51 = vsel %vm174_vm14, %v224_v46, %v222_v47  ;;  %v1044_v52 = vcombine.high %v271_v48, %v272_v49  ;;  %v1043_v53 = vcombine.low %v271_v48, %v272_v49 }
 0x107   :  { %v987_v54 = vcombine.low %v225_v50, %v228_v51  ;;  %v988_v55 = vcombine.high %v225_v50, %v228_v51 }
 0x108   :  { %729 = vmatprep.subr.bf16.mxu0 %v1044_v52 }
 0x109   :  { %v205_v56 = vpop.permute.xlu1 %204  ;;  %v203_v57 = vpop.permute.xlu0 %202  ;;  %730 = vmatpush1.bf16.msra.mxu0 %v1043_v53  ;;  %v238_v58 = vsel %vm1225_vm5, %v1205_v5, %v987_v54  ;;  %v239_v59 = vsel %vm1225_vm5, %v1207_v6, %v988_v55 }
 0x10a   :  { %v206_v60 = vsel %vm148_vm13, %v205_v56, %v203_v57  ;;  %v209_v61 = vsel %vm148_vm13, %v203_v57, %v205_v56  ;;  %v1040_v62 = vcombine.high %v238_v58, %v239_v59  ;;  %v1039_v63 = vcombine.low %v238_v58, %v239_v59 }
 0x10b   :  { %v985_v0 = vcombine.low %v209_v61, %v206_v60  ;;  %v986_v1 = vcombine.high %v209_v61, %v206_v60 }
 0x10c   :  { %731 = vmatprep.subr.bf16.mxu0 %v1040_v62  ;;  %v1416_v62 = vcombine.low %v1314_v37, %v1314_v37  ;;  %v532_v37 = vld [vmem:[%s1517_s2] sm:$0xff] }
 0x10d   :  { %v173_v2 = vpop.permute.xlu1 %172  ;;  %v171_v3 = vpop.permute.xlu0 %170  ;;  %732 = vmatpush1.bf16.msra.mxu0 %v1039_v63  ;;  %v219_v4 = vsel %vm1217_vm4, %v1205_v5, %v985_v0  ;;  %v220_v11 = vsel %vm1217_vm4, %v1207_v6, %v986_v1 }
 0x10e   :  { %v175_v12 = vsel %vm174_vm14, %v171_v3, %v173_v2  ;;  %v179_v13 = vsel %vm174_vm14, %v173_v2, %v171_v3  ;;  %733 = vmatprep.subr.bf16.mxu0 %v1215_v8  ;;  %v1032_v15 = vcombine.high %v219_v4, %v220_v11  ;;  %v1031_v22 = vcombine.low %v219_v4, %v220_v11 }
 0x10f   :  { %v983_v16 = vcombine.low %v175_v12, %v179_v13  ;;  %v984_v17 = vcombine.high %v175_v12, %v179_v13 }
 0x111   :  { %v147_v18 = vpop.permute.xlu1 %146  ;;  %v142_v19 = vpop.permute.xlu0 %141  ;;  %734 = vmatpush1.bf16.msra.mxu0 %v1211_v7  ;;  %v194_v5 = vsel %vm1225_vm5, %v1270_v29, %v983_v16  ;;  %v195_v6 = vsel %vm1225_vm5, %v1275_v30, %v984_v17 }
 0x112   :  { %v149_v23 = vsel %vm148_vm13, %v147_v18, %v142_v19  ;;  %v153_v8 = vsel %vm148_vm13, %v142_v19, %v147_v18  ;;  %735 = vmatprep.subr.bf16.mxu0 %v1032_v15  ;;  %v1028_v24 = vcombine.high %v194_v5, %v195_v6  ;;  %v1027_v40 = vcombine.low %v194_v5, %v195_v6 }
 0x113   :  { %v981_v25 = vcombine.low %v153_v8, %v149_v23  ;;  %v982_v26 = vcombine.high %v153_v8, %v149_v23 }
 0x115   :  { %v276_v27 = vpop.permute.xlu1 %275  ;;  %v274_v38 = vpop.permute.xlu0 %273  ;;  %736 = vmatpush1.bf16.msra.mxu0 %v1031_v22  ;;  %v168_v45 = vsel %vm1217_vm4, %v1270_v29, %v981_v25  ;;  %v169_v46 = vsel %vm1217_vm4, %v1275_v30, %v982_v26 }
 0x116   :  { %v277_v7 = vsel %vm174_vm14, %v274_v38, %v276_v27  ;;  %v280_v39 = vsel %vm174_vm14, %v276_v27, %v274_v38  ;;  %737 = vmatprep.subr.bf16.mxu0 %v1028_v24  ;;  %v1020_v51 = vcombine.high %v168_v45, %v169_v46  ;;  %v1019_v57 = vcombine.low %v168_v45, %v169_v46 }
 0x117   :  { %v993_v41 = vcombine.low %v277_v7, %v280_v39  ;;  %v994_v42 = vcombine.high %v277_v7, %v280_v39 }
 0x119   :  { %v331_v43 = vpop.permute.xlu1 %330  ;;  %v329_v44 = vpop.permute.xlu0 %328  ;;  %738 = vmatpush1.bf16.msra.mxu0 %v1027_v40  ;;  %v290_v30 = vsel %vm1225_vm5, %v1243_v20, %v993_v41 }
 0x11a   :  { %v332_v47 = vsel %vm114_vm7, %v329_v44, %v331_v43  ;;  %v335_v48 = vsel %vm114_vm7, %v331_v43, %v329_v44  ;;  %739 = vmatprep.subr.bf16.mxu0 %v1283_v31  ;;  %v291_v31 = vsel %vm1225_vm5, %v1248_v21, %v994_v42 }
 0x11b   :  { %v999_v49 = vcombine.low %v332_v47, %v335_v48  ;;  %v1000_v50 = vcombine.high %v332_v47, %v335_v48  ;;  %v1052_v20 = vcombine.high %v290_v30, %v291_v31  ;;  %v1051_v59 = vcombine.low %v290_v30, %v291_v31 }
 0x11d   :  { %v1378_v52 = vsel %vm1234_vm9, %v1297_v33, %v999_v49  ;;  %v1383_v29 = vsel %vm1234_vm9, %v1299_v34, %v1000_v50  ;;  %740 = vmatpush1.bf16.msra.mxu0 %v1287_v32  ;;  %v312_v53 = vpop.permute.xlu1 %311  ;;  %v307_v54 = vpop.permute.xlu0 %306 }
 0x11e   :  { %741 = vmatprep.subr.bf16.mxu0 %v1020_v51  ;;  %v1012_v55 = vcombine.low %v1378_v52, %v1383_v29  ;;  %v1011_v14 = vcombine.high %v1378_v52, %v1383_v29  ;;  %v313_v56 = vsel %vm88_vm10, %v312_v53, %v307_v54  ;;  %v316_v32 = vsel %vm88_vm10, %v307_v54, %v312_v53 }
 0x11f   :  { %v997_v21 = vcombine.low %v316_v32, %v313_v56  ;;  %v998_v58 = vcombine.high %v316_v32, %v313_v56 }
 0x120   :  { %453 = vrot.lane.b32.xlu1 %v1012_v55, %s1161_s29  ;;  %448 = vrot.lane.b32.xlu0 %v1011_v14, %s1161_s29 }
 0x121   :  { %742 = vmatpush1.bf16.msra.mxu0 %v1019_v57  ;;  %768 = vmatprep.subr.bf16.mxu1 %v1011_v14  ;;  %v1407_v60 = vsel %vm1259_vm12, %v1297_v33, %v997_v21  ;;  %v1412_v61 = vsel %vm1259_vm12, %v1299_v34, %v998_v58 }
 0x122   :  { %757 = vmatprep.subr.bf16.mxu0 %v1052_v20  ;;  %769 = vmatpush1.bf16.msra.mxu1 %v1012_v55  ;;  %v1424_v63 = vcombine.low %v1407_v60, %v1412_v61  ;;  %v1428_v28 = vcombine.high %v1407_v60, %v1412_v61 }
 0x124   :  { %420 = vrot.lane.b32.xlu1 %v1305_v35, %s1162_s30  ;;  %418 = vrot.lane.b32.xlu0 %v1309_v36, %s1162_s30 }
 0x125   :  { %758 = vmatpush2.bf16.msra.mxu0 %v1051_v59 }
 0x128   :  { %401 = vrot.lane.b32.xlu1 %v1309_v36, %s1161_s29  ;;  %399 = vrot.lane.b32.xlu0 %v1305_v35, %s1161_s29 }
 0x129   :  { %760 = vmatmul.mubr.bf16.vlgmr.msra.gmra.mxu0 %v1416_v62 }
 0x12c   :  { %374 = vrot.lane.b32.xlu0 %v1424_v63, %s1162_s30  ;;  %376 = vrot.lane.b32.xlu1 %v1428_v28, %s1162_s30 }
 0x130   :  { %352 = vrot.lane.b32.xlu0 %v1428_v28, %s1161_s29  ;;  %357 = vrot.lane.b32.xlu1 %v1424_v63, %s1161_s29 }
 0x134   :  { %470 = vrot.lane.b32.xlu0 %v1012_v55, %s1162_s30  ;;  %472 = vrot.lane.b32.xlu1 %v1011_v14, %s1162_s30 }
 0x138   :  { %535 = vperm.xlu0 %1077, %v532_v37  }
 0x192   :  { %v454_v0 = vpop.permute.xlu1 %453  ;;  %v449_v1 = vpop.permute.xlu0 %448 }
 0x193   :  { %v455_v2 = vsel %vm148_vm13, %v454_v0, %v449_v1  ;;  %v458_v3 = vsel %vm148_vm13, %v449_v1, %v454_v0 }
 0x194   :  { %v1013_v4 = vcombine.low %v458_v3, %v455_v2  ;;  %v1014_v11 = vcombine.high %v458_v3, %v455_v2 }
 0x196   :  { %v421_v12 = vpop.permute.xlu1 %420  ;;  %v419_v13 = vpop.permute.xlu0 %418  ;;  %v468_v15 = vsel %vm1217_vm4, %v1378_v52, %v1013_v4  ;;  %v469_v16 = vsel %vm1217_vm4, %v1383_v29, %v1014_v11 }
 0x197   :  { %v422_v17 = vsel %vm174_vm14, %v419_v13, %v421_v12  ;;  %v425_v18 = vsel %vm174_vm14, %v421_v12, %v419_v13  ;;  %v1046_v19 = vcombine.high %v468_v15, %v469_v16  ;;  %v1045_v22 = vcombine.low %v468_v15, %v469_v16 }
 0x198   :  { %v1009_v5 = vcombine.low %v422_v17, %v425_v18  ;;  %v1010_v6 = vcombine.high %v422_v17, %v425_v18 }
 0x199   :  { %770 = vmatprep.subr.bf16.mxu1 %v1046_v19 }
 0x19a   :  { %v402_v23 = vpop.permute.xlu1 %401  ;;  %771 = vmatpush1.bf16.msra.mxu1 %v1045_v22  ;;  %v400_v8 = vpop.permute.xlu0 %399  ;;  %v435_v24 = vsel %vm1225_vm5, %v1297_v33, %v1009_v5  ;;  %v436_v25 = vsel %vm1225_vm5, %v1299_v34, %v1010_v6 }
 0x19b   :  { %v403_v26 = vsel %vm148_vm13, %v402_v23, %v400_v8  ;;  %v406_v27 = vsel %vm148_vm13, %v400_v8, %v402_v23  ;;  %v1042_v38 = vcombine.high %v435_v24, %v436_v25  ;;  %v1041_v7 = vcombine.low %v435_v24, %v436_v25 }
 0x19c   :  { %v1007_v39 = vcombine.low %v406_v27, %v403_v26  ;;  %v1008_v40 = vcombine.high %v406_v27, %v403_v26 }
 0x19d   :  { %772 = vmatprep.subr.bf16.mxu1 %v1042_v38 }
 0x19e   :  { %v377_v41 = vpop.permute.xlu1 %376  ;;  %773 = vmatpush1.bf16.msra.mxu1 %v1041_v7  ;;  %v375_v42 = vpop.permute.xlu0 %374  ;;  %v416_v43 = vsel %vm1217_vm4, %v1297_v33, %v1007_v39  ;;  %v417_v44 = vsel %vm1217_vm4, %v1299_v34, %v1008_v40 }
 0x19f   :  { %v378_v45 = vsel %vm174_vm14, %v375_v42, %v377_v41  ;;  %v381_v46 = vsel %vm174_vm14, %v377_v41, %v375_v42  ;;  %774 = vmatprep.subr.bf16.mxu1 %v1305_v35  ;;  %v1034_v47 = vcombine.high %v416_v43, %v417_v44  ;;  %v1033_v30 = vcombine.low %v416_v43, %v417_v44  ;;  %v842_v41 = vld [vmem:[%s1518_s3] sm:$0xff] }
 0x1a0   :  { %v1005_v48 = vcombine.low %v378_v45, %v381_v46  ;;  %v1006_v49 = vcombine.high %v378_v45, %v381_v46  ;;  %v850_v42 = vld [vmem:[%s1519_s4] sm:$0xff] }
 0x1a2   :  { %v358_v50 = vpop.permute.xlu1 %357  ;;  %775 = vmatpush1.bf16.msra.mxu1 %v1309_v36  ;;  %v353_v51 = vpop.permute.xlu0 %352  ;;  %v391_v33 = vsel %vm1225_vm5, %v1407_v60, %v1005_v48  ;;  %v392_v34 = vsel %vm1225_vm5, %v1412_v61, %v1006_v49 }
 0x1a3   :  { %v359_v31 = vsel %vm148_vm13, %v358_v50, %v353_v51  ;;  %v362_v35 = vsel %vm148_vm13, %v353_v51, %v358_v50  ;;  %776 = vmatprep.subr.bf16.mxu1 %v1034_v47  ;;  %v1030_v53 = vcombine.high %v391_v33, %v392_v34  ;;  %v1029_v57 = vcombine.low %v391_v33, %v392_v34 }
 0x1a4   :  { %v1003_v54 = vcombine.low %v362_v35, %v359_v31  ;;  %v1004_v55 = vcombine.high %v362_v35, %v359_v31 }
 0x1a6   :  { %v473_v14 = vpop.permute.xlu1 %472  ;;  %777 = vmatpush1.bf16.msra.mxu1 %v1033_v30  ;;  %v471_v36 = vpop.permute.xlu0 %470  ;;  %v372_v58 = vsel %vm1217_vm4, %v1407_v60, %v1003_v54  ;;  %v373_v59 = vsel %vm1217_vm4, %v1412_v61, %v1004_v55 }
 0x1a7   :  { %v474_v56 = vsel %vm174_vm14, %v471_v36, %v473_v14  ;;  %v477_v32 = vsel %vm174_vm14, %v473_v14, %v471_v36  ;;  %778 = vmatprep.subr.bf16.mxu1 %v1030_v53  ;;  %v1022_v37 = vcombine.high %v372_v58, %v373_v59  ;;  %v1021_v2 = vcombine.low %v372_v58, %v373_v59 }
 0x1a8   :  { %v1015_v20 = vcombine.low %v474_v56, %v477_v32  ;;  %v1016_v21 = vcombine.high %v474_v56, %v477_v32 }
 0x1aa   :  { %779 = vmatpush1.bf16.msra.mxu1 %v1029_v57  ;;  %v487_v0 = vsel %vm1225_vm5, %v1378_v52, %v1015_v20  ;;  %v488_v1 = vsel %vm1225_vm5, %v1383_v29, %v1016_v21 }
 0x1ab   :  { %780 = vmatprep.subr.bf16.mxu1 %v1428_v28  ;;  %v1054_v60 = vcombine.high %v487_v0, %v488_v1  ;;  %v1053_v9 = vcombine.low %v487_v0, %v488_v1 }
 0x1ae   :  { %781 = vmatpush1.bf16.msra.mxu1 %v1424_v63 }
 0x1af   :  { %782 = vmatprep.subr.bf16.mxu1 %v1022_v37 }
 0x1b2   :  { %783 = vmatpush1.bf16.msra.mxu1 %v1021_v2 }
 0x1b3   :  { %798 = vmatprep.subr.bf16.mxu1 %v1054_v60  ;;  %v536_v61 = vpop.permute.xlu0 %535 }
 0x1b6   :  { %799 = vmatpush2.bf16.msra.mxu1 %v1053_v9 }
 0x1b9   :  { %801 = vmatmul.mubr.bf16.vlgmr.msra.gmra.mxu1 %v1416_v62 }
 0x1e9   :  { %v761_v28 = vpop.f32.mrf.mxu0 }
 0x1ea   :  { %v762_v63 = vadd.f32 %v761_v28, %v536_v61 }
 0x1eb   :  { %v763_v3 = vpop.f32.mrf.mxu0 }
 0x1ec   :  { %vm866_vm15 = vcmp.ge.f32.partialorder %v762_v63, 0.0  ;;  %v868_v4 = vmul.f32 0.02, %v762_v63  ;;  %v764_v52 = vadd.f32 %v763_v3, %v536_v61 }
 0x1ed   :  { %v765_v11 = vpop.f32.mrf.mxu0 }
 0x1ee   :  { %v870_v12 = vsel %vm866_vm15, %v762_v63, %v868_v4  ;;  %vm867_vm0 = vcmp.ge.f32.partialorder %v764_v52, 0.0  ;;  %v869_v10 = vmul.f32 0.02, %v764_v52  ;;  %v809_v29 = vadd.f32 %v764_v52, %v762_v63 }
 0x1ef   :  { %872 = vst [vmem:[#allocation7] sm:$0xff] %v870_v12  ;;  %v766_v13 = vpop.f32.mrf.mxu0 }
 0x1f0   :  { %v871_v15 = vsel %vm867_vm0, %v764_v52, %v869_v10  ;;  %810 = vadd.xlane.f32.xlu1 %v809_v29 }
 0x1f1   :  { %873 = vst [vmem:[#allocation7 + $0x8] sm:$0xff] %v871_v15 }
 0x279   :  { %v811_v16 = vpop.xlane.xlu1 %810  ;;  %v802_v17 = vpop.f32.mrf.mxu1 }
 0x27a   :  { %v812_v62 = vrot.slane %v811_v16, 4  ;;  %v803_v18 = vadd.f32 %v802_v17, %v536_v61 }
 0x27b   :  { %v804_v19 = vpop.f32.mrf.mxu1 }
 0x27c   :  { %v813_v22 = vadd.f32 %v812_v62, %v811_v16  ;;  %vm931_vm1 = vcmp.ge.f32.partialorder %v803_v18, 0.0  ;;  %v933_v5 = vmul.f32 0.02, %v803_v18  ;;  %v805_v6 = vadd.f32 %v804_v19, %v536_v61 }
 0x27d   :  { %v806_v23 = vpop.f32.mrf.mxu1 }
 0x27e   :  { %v814_v8 = vrot.slane %v813_v22, 2  ;;  %v935_v24 = vsel %vm931_vm1, %v803_v18, %v933_v5  ;;  %vm932_vm2 = vcmp.ge.f32.partialorder %v805_v6, 0.0  ;;  %v934_v25 = vmul.f32 0.02, %v805_v6 }
 0x27f   :  { %938 = vst [vmem:[#allocation7 + $0x10] sm:$0xff] %v935_v24  ;;  %v874_v26 = vadd.f32 %v805_v6, %v803_v18  ;;  %v807_v27 = vpop.f32.mrf.mxu1 }
 0x280   :  { %v936_v38 = vsel %vm932_vm2, %v805_v6, %v934_v25  ;;  %v815_v7 = vadd.f32 %v814_v8, %v813_v22 }
 0x281   :  { %939 = vst [vmem:[#allocation7 + $0x18] sm:$0xff] %v936_v38  ;;  %875 = vadd.xlane.f32.xlu1 %v874_v26 }
 0x282   :  { %v816_v39 = vrot.slane %v815_v7, 1 }
 0x284   :  { %v817_v40 = vadd.f32 %v816_v39, %v815_v7 }
 0x286   :  { %1057 = vpush %v817_v40 }
 0x292   :  { %845 = vperm.xlu1 %1078, %v842_v41  }
 0x296   :  { %853 = vperm.xlu1 %1078, %v850_v42  }
 0x29a   :  { %917 = vperm.xlu1 %1078, %v850_v42  }
 0x2b7   :  { %s1058_s13 = spop %1057 }
 0x2b8   :  { %v819_v43 = vstv %s1058_s13 }
 0x2b9   :  { %v821_v44 = vmul.f32 0.00048828125, %v819_v43 }
 0x2bb   :  { %v822_v45 = vsub.f32 %v762_v63, %v821_v44  ;;  %v823_v46 = vsub.f32 %v764_v52, %v821_v44 }
 0x2bd   :  { %v824_v47 = vmul.f32 %v822_v45, %v822_v45  ;;  %v825_v48 = vmul.f32 %v823_v46, %v823_v46 }
 0x2bf   :  { %v826_v49 = vadd.f32 %v825_v48, %v824_v47 }
 0x2c1   :  { %827 = vadd.xlane.f32.xlu0 %v826_v49 }
 0x30a   :  { %v876_v50 = vpop.xlane.xlu1 %875 }
 0x30b   :  { %v877_v51 = vrot.slane %v876_v50, 4 }
 0x30d   :  { %v878_v30 = vadd.f32 %v877_v51, %v876_v50 }
 0x30e   :  { %v846_v9 = vpop.permute.xlu1 %845 }
 0x30f   :  { %v879_v33 = vrot.slane %v878_v30, 2 }
 0x311   :  { %v880_v53 = vadd.f32 %v879_v33, %v878_v30 }
 0x312   :  { %v854_v3 = vpop.permute.xlu1 %853 }
 0x313   :  { %v881_v14 = vrot.slane %v880_v53, 1 }
 0x315   :  { %v882_v32 = vadd.f32 %v881_v14, %v880_v53 }
 0x34a   :  { %v828_v34 = vpop.xlane.xlu0 %827 }
 0x34b   :  { %v829_v31 = vrot.slane %v828_v34, 4 }
 0x34d   :  { %v830_v35 = vadd.f32 %v829_v31, %v828_v34 }
 0x34f   :  { %v831_v54 = vrot.slane %v830_v35, 2 }
 0x351   :  { %v832_v55 = vadd.f32 %v831_v54, %v830_v35 }
 0x353   :  { %v833_v36 = vrot.slane %v832_v55, 1 }
 0x355   :  { %v834_v56 = vadd.f32 %v833_v36, %v832_v55 }
 0x357   :  { %1059 = vpush %v834_v56 }
 0x358   :  { %1061 = vpush %v882_v32 }
 0x388   :  { %s1060_s3 = spop %1059 }
 0x389   :  { %v836_v57 = vstv %s1060_s3  ;;  %s1062_s4 = spop %1061 }
 0x38a   :  { %v837_v20 = vmul.f32 0.00048828125, %v836_v57  ;;  %v884_v21 = vstv %s1062_s4 }
 0x38b   :  { %v885_v58 = vmul.f32 0.00048828125, %v884_v21 }
 0x38c   :  { %v838_v59 = vadd.f32 1e-05, %v837_v20 }
 0x38d   :  { %v886_v37 = vsub.f32 %v803_v18, %v885_v58  ;;  %v887_v0 = vsub.f32 %v805_v6, %v885_v58 }
 0x38e   :  { %1085 = vrsqrt.f32 %v838_v59 }
 0x38f   :  { %v888_v1 = vmul.f32 %v886_v37, %v886_v37  ;;  %v889_v2 = vmul.f32 %v887_v0, %v887_v0 }
 0x391   :  { %v890_v60 = vadd.f32 %v889_v2, %v888_v1 }
 0x393   :  { %891 = vadd.xlane.f32.xlu0 %v890_v60 }
 0x39b   :  { %v1086_v61 = vpop.eup %1085 }
 0x39c   :  { %v840_v28 = vmul.f32 %v1086_v61, %v822_v45  ;;  %v841_v63 = vmul.f32 %v1086_v61, %v823_v46 }
 0x39e   :  { %v848_v4 = vmul.f32 %v846_v9, %v840_v28  ;;  %v849_v52 = vmul.f32 %v846_v9, %v841_v63 }
 0x3a0   :  { %v856_v11 = vadd.f32 %v854_v3, %v848_v4  ;;  %v857_v12 = vadd.f32 %v854_v3, %v849_v52 }
 0x3a2   :  { %vm858_vm3 = vcmp.ge.f32.partialorder %v856_v11, 0.0  ;;  %vm859_vm4 = vcmp.ge.f32.partialorder %v857_v12, 0.0  ;;  %v860_v10 = vmul.f32 0.02, %v856_v11  ;;  %v861_v29 = vmul.f32 0.02, %v857_v12 }
 0x3a4   :  { %v862_v13 = vsel %vm858_vm3, %v856_v11, %v860_v10  ;;  %v863_v15 = vsel %vm859_vm4, %v857_v12, %v861_v29 }
 0x3a5   :  { %864 = vst [vmem:[#allocation6] sm:$0xff] %v862_v13  ;;  %865 = vst [vmem:[#allocation6 + $0x8] sm:$0xff] %v863_v15 }
 0x3a9   :  { %909 = vperm.xlu0 %1077, %v842_v41  }
 0x3aa   :  { %1120 = shalt.err (!%p1117_p9)
}
 0x3ab   :  { %s1165_s17 = smov 256   ;;  %v918_v39 = vpop.permute.xlu1 %917 }
 0x3ac   :  { %963 = dma.vmem_to_hbm [thread:$0]  %s958_s15, 512, %s1521_s6, [#allocation8], %s1165_s17, %s1165_s17, %s1159_s28  }
 0x3ad   :  { %s1166_s6 = smov [#allocation6]  }
 0x3ae   :  { %s945_s21 = sshll.u32 %s1166_s6, 4  ;;  %s946_s21 = int_to_ptr.vmem [resolvable:$true] %s945_s21 }
 0x3af   :  { %s1129_s22 = scalar_lea.vmem %s946_s21, 512  ;;  %p1134_p11 = scmp.lt.s32.totalorder %s946_s21, %s946_s21 }
 0x3b0   :  { %p1130_p10 = scmp.ne.s32.totalorder %s946_s21, %s1129_s22  ;;  %p1135_p12 = scmp.lt.s32.totalorder %s1129_s22, %s1129_s22 }
 0x3b2   :  { %p1136_p13 = por %p1135_p12, %p1134_p11 }
 0x3b4   :  { %p1137_p0 = pnand %p1136_p13, %p1130_p10 }
 0x41c   :  { %v892_v16 = vpop.xlane.xlu0 %891 }
 0x41d   :  { %v893_v17 = vrot.slane %v892_v16, 4 }
 0x41f   :  { %v894_v62 = vadd.f32 %v893_v17, %v892_v16 }
 0x421   :  { %v895_v18 = vrot.slane %v894_v62, 2 }
 0x423   :  { %v896_v19 = vadd.f32 %v895_v18, %v894_v62 }
 0x424   :  { %v910_v27 = vpop.permute.xlu0 %909 }
 0x425   :  { %v897_v22 = vrot.slane %v896_v19, 1 }
 0x427   :  { %v898_v5 = vadd.f32 %v897_v22, %v896_v19 }
 0x429   :  { %1063 = vpush %v898_v5 }
 0x45a   :  { %s1064_s20 = spop %1063 }
 0x45b   :  { %v900_v6 = vstv %s1064_s20 }
 0x45c   :  { %v901_v23 = vmul.f32 0.00048828125, %v900_v6 }
 0x45e   :  { %v902_v8 = vadd.f32 1e-05, %v901_v23 }
 0x460   :  { %1087 = vrsqrt.f32 %v902_v8 }
 0x46d   :  { %v1088_v24 = vpop.eup %1087 }
 0x46e   :  { %v904_v25 = vmul.f32 %v1088_v24, %v886_v37  ;;  %v905_v26 = vmul.f32 %v1088_v24, %v887_v0 }
 0x470   :  { %v912_v38 = vmul.f32 %v910_v27, %v904_v25  ;;  %v913_v7 = vmul.f32 %v910_v27, %v905_v26 }
 0x472   :  { %v920_v40 = vadd.f32 %v918_v39, %v912_v38  ;;  %v921_v41 = vadd.f32 %v918_v39, %v913_v7 }
 0x474   :  { %vm922_vm5 = vcmp.ge.f32.partialorder %v920_v40, 0.0  ;;  %vm923_vm6 = vcmp.ge.f32.partialorder %v921_v41, 0.0  ;;  %v924_v42 = vmul.f32 0.02, %v920_v40  ;;  %v925_v43 = vmul.f32 0.02, %v921_v41 }
 0x476   :  { %v926_v44 = vsel %vm922_vm5, %v920_v40, %v924_v42  ;;  %v927_v45 = vsel %vm923_vm6, %v921_v41, %v925_v43 }
 0x477   :  { %929 = vst [vmem:[#allocation6 + $0x10] sm:$0xff] %v926_v44  ;;  %930 = vst [vmem:[#allocation6 + $0x18] sm:$0xff] %v927_v45 }
 0x478   :  { %1140 = shalt.err (!%p1137_p0)
}
 0x479   :  { %951 = dma.vmem_to_hbm [thread:$0]  %s946_s21, 512, %s1520_s5, [#allocation5], %s1165_s17, %s1165_s17, %s1159_s28  }
 0x47a   :  { %1151 = dma.done.wait [#allocation5], 512  }
 0x47b   :  { %1152 = vsyncadd [#allocation5], 4294966784 }
 0x47c   :  { %1153 = dma.done.wait [#allocation8], 512  }
 0x47d   :  { %1154 = vsyncadd [#allocation8], 4294966784 }
 0x47e   :  { %970 = vsyncpa [#allocation4], 1 }
 0x47f   :  { %971 = vsyncpa [#allocation5], 1 }
 0x480   :  { %972 = vsyncpa [#allocation8], 1 }

</bundles_post_ra>
